<compile_context>
chip_gen: v7x
topology: tpu7x:2x2x1
jax: 0.10.0
libtpu: 0.0.40
codegen_flags: <defaults>
</compile_context>

<pallas_src>
import numpy as np
import jax
import jax.numpy as jnp
from jax.experimental import pallas as pl
from jax.experimental.pallas import tpu as pltpu


_VMEM_BUDGET_BYTES = 40 * 1024 * 1024   # conservative across v5e/v6e (128 MiB) and v7x (64 MiB)


# --------------------------------------------------------------------------- #
# Host-side 2-D DFT matrix construction (numpy; constants under jit)
# --------------------------------------------------------------------------- #
def _dft2_matrices(H, W, kf_pad, dtype):
    """Full 2-D real-DFT matrices with 'ortho' scaling and irfft Hermitian
    duplication weights folded in.

      forward:  A = x_flat @ (Ffwd_re + i*Ffwd_im)      x_flat: (.., H*W)
      inverse:  y_flat = Y_re @ Finv_re + Y_im @ Finv_im

    Frequency flattening order is (kh major, kw minor) with kw in [0, W//2+1);
    the frequency axis is zero-padded to kf_pad columns/rows.
    """
    Wr = W // 2 + 1
    HW, Kf = H * W, H * Wr
    s = 1.0 / np.sqrt(H * W)

    h = np.arange(H)
    w = np.arange(W)
    kh = np.arange(H)
    kw = np.arange(Wr)
    ph_h = np.outer(h, kh) / H                       # (H, H)
    ph_w = np.outer(w, kw) / W                       # (W, Wr)
    # phase[(h*W+w), (kh*Wr+kw)] = 2*pi*(kh*h/H + kw*w/W)
    phase = 2.0 * np.pi * (ph_h[:, None, :, None] + ph_w[None, :, None, :])
    phase = phase.reshape(HW, Kf)

    ffwd_re = np.cos(phase) * s                      # (HW, Kf)
    ffwd_im = -np.sin(phase) * s

    # Hermitian duplication weights along kw (1 at DC / Nyquist, 2 elsewhere);
    # the imaginary parts of those bins are dropped, matching jnp/torch irfft.
    a = np.full((Wr,), 2.0)
    a[0] = 1.0
    if W % 2 == 0:
        a[-1] = 1.0
    a_flat = np.tile(a, H)[:, None]                  # (Kf, 1): index kh*Wr+kw -> a[kw]

    finv_re = a_flat * np.cos(phase.T) * s           # (Kf, HW)
    finv_im = -a_flat * np.sin(phase.T) * s

    if kf_pad != Kf:
        pad_c = ((0, 0), (0, kf_pad - Kf))
        pad_r = ((0, kf_pad - Kf), (0, 0))
        ffwd_re = np.pad(ffwd_re, pad_c)
        ffwd_im = np.pad(ffwd_im, pad_c)
        finv_re = np.pad(finv_re, pad_r)
        finv_im = np.pad(finv_im, pad_r)

    return tuple(jnp.asarray(m, dtype=dtype)
                 for m in (ffwd_re, ffwd_im, finv_re, finv_im))


# --------------------------------------------------------------------------- #
# Fused Pallas kernel: rfft2 -> complex filter -> irfft2, per (C-tile, batch)
# --------------------------------------------------------------------------- #
def _global_filter_kernel(x_ref, wre_ref, wim_ref,
                          ffr_ref, ffi_ref, fir_ref, fii_ref, o_ref):
    mm_dtype = ffr_ref.dtype
    x = x_ref[0].astype(mm_dtype)                                  # (c_tile, H*W)

    # rfft2 (both axes fused): one K=H*W matmul per re/im, f32 accumulation.
    a_re = jnp.dot(x, ffr_ref[...], preferred_element_type=jnp.float32)
    a_im = jnp.dot(x, ffi_ref[...], preferred_element_type=jnp.float32)

    # Elementwise complex multiply with the learned filter (kept in f32).
    w_re = wre_ref[...]
    w_im = wim_ref[...]
    y_re = a_re * w_re - a_im * w_im
    y_im = a_re * w_im + a_im * w_re

    # irfft2 (both axes fused): Hermitian duplication + ortho scale are baked
    # into the inverse matrices, so the real output is just two matmuls.
    out = (jnp.dot(y_re.astype(mm_dtype), fir_ref[...],
                   preferred_element_type=jnp.float32)
           + jnp.dot(y_im.astype(mm_dtype), fii_ref[...],
                     preferred_element_type=jnp.float32))
    o_ref[0] = out.astype(o_ref.dtype)


def _pick_c_tile(C, HW, kf_pad, in_itemsize, mm_itemsize, budget):
    """Largest channel tile (divisor of C, multiple of 8 or == C) whose
    double-buffered footprint + constants fit the VMEM budget."""
    const_bytes = 2 * 4 * HW * kf_pad * mm_itemsize           # 4 DFT matrices, 2x buffered

    def tile_bytes(d):
        act = 2 * 2 * d * HW * in_itemsize                    # x + out blocks, 2x buffered
        wgt = 2 * 2 * d * kf_pad * 4                          # w_re + w_im blocks (f32)
        tmp = 4 * d * kf_pad * 4 + d * HW * 4                 # in-kernel f32 intermediates
        return act + wgt + tmp

    chosen = None
    for d in range(min(C, 256), 0, -1):
        if C % d:
            continue
        if d != C and d % 8:                                  # (8,128) sublane rule
            continue
        if const_bytes + tile_bytes(d) <= budget:
            chosen = d
            break
    if chosen is None:                                        # smallest legal tile
        for d in range(1, C + 1):
            if C % d == 0 and (d == C or d % 8 == 0):
                chosen = d
                break
    return chosen, const_bytes + tile_bytes(chosen)


def global_filter_forward(x, complex_weight, *, matmul_dtype=jnp.float32):
    """x: (B, C, H, W); complex_weight: (H, W//2+1, C, 2) as in the torch module.

    matmul_dtype=jnp.bfloat16 narrows only the DFT matmul operands (f32
    accumulation and f32 filter multiply are kept) for ~3x MXU rate on v6e/v7x.
    """
    B, C, H, W = x.shape
    Wr = W // 2 + 1
    HW, Kf = H * W, H * Wr
    assert complex_weight.shape == (H, Wr, C, 2), complex_weight.shape

    kf_pad = max(128, ((Kf + 127) // 128) * 128)              # lane-dense frequency axis
    mm_itemsize = jnp.dtype(matmul_dtype).itemsize
    if 2 * 4 * HW * kf_pad * mm_itemsize > _VMEM_BUDGET_BYTES:
        # TODO(synk): separable per-axis DFT fallback for large H*W so the 2-D
        # DFT matrices stay VMEM-resident; this path targets the GFNet-style
        # small-spatial regime (H*W <= ~2K).
        raise NotImplementedError(
            f"2-D DFT matrices for H*W={HW} exceed the VMEM budget")

    ffr, ffi, fir, fii = _dft2_matrices(H, W, kf_pad, matmul_dtype)

    # Filter -> (C, H*Wr) flattened in the same (kh major, kw minor) order as
    # the DFT frequency axis, zero-padded to kf_pad (tiny host-level ops).
    wgt = jnp.transpose(complex_weight, (2, 0, 1, 3)).astype(jnp.float32)
    w_re = wgt[..., 0].reshape(C, Kf)
    w_im = wgt[..., 1].reshape(C, Kf)
    if kf_pad != Kf:
        w_re = jnp.pad(w_re, ((0, 0), (0, kf_pad - Kf)))
        w_im = jnp.pad(w_im, ((0, 0), (0, kf_pad - Kf)))

    # Lane-dense HBM view: free metadata reshape of row-major NCHW.
    x2 = x.reshape(B, C, HW)

    c_tile, footprint = _pick_c_tile(C, HW, kf_pad, x.dtype.itemsize,
                                     mm_itemsize, _VMEM_BUDGET_BYTES)
    grid = (C // c_tile, B)            # batch innermost -> filter blocks stay resident
    vmem_limit = int(min(48 * 1024 * 1024,
                         max(2 * footprint, 16 * 1024 * 1024)))

    const_spec = lambda shape: pl.BlockSpec(shape, lambda c, b: (0, 0))

    out = pl.pallas_call(
        _global_filter_kernel,
        out_shape=jax.ShapeDtypeStruct((B, C, HW), x.dtype),
        grid_spec=pltpu.PrefetchScalarGridSpec(
            num_scalar_prefetch=0,
            grid=grid,
            in_specs=[
                pl.BlockSpec((1, c_tile, HW), lambda c, b: (b, c, 0)),    # x
                pl.BlockSpec((c_tile, kf_pad), lambda c, b: (c, 0)),      # w_re
                pl.BlockSpec((c_tile, kf_pad), lambda c, b: (c, 0)),      # w_im
                const_spec((HW, kf_pad)),                                 # Ffwd_re
                const_spec((HW, kf_pad)),                                 # Ffwd_im
                const_spec((kf_pad, HW)),                                 # Finv_re
                const_spec((kf_pad, HW)),                                 # Finv_im
            ],
            out_specs=pl.BlockSpec((1, c_tile, HW), lambda c, b: (b, c, 0)),
        ),
        compiler_params=pltpu.CompilerParams(
            dimension_semantics=("parallel", "parallel"),
            vmem_limit_bytes=vmem_limit),
    )(x2, w_re, w_im, ffr, ffi, fir, fii)

    return out.reshape(B, C, H, W)


# --------------------------------------------------------------------------- #
# Pure-JAX reference mirroring the torch code (jnp.fft), for a sanity check
# --------------------------------------------------------------------------- #
def _ref_global_filter(x, complex_weight):
    B, C, H, W = x.shape
    xp = jnp.transpose(x, (0, 2, 3, 1)).astype(jnp.float32)      # NHWC
    X = jnp.fft.rfft2(xp, axes=(1, 2), norm='ortho')
    wgt = complex_weight[..., 0] + 1j * complex_weight[..., 1]   # (H, Wr, C)
    X = X * wgt
    y = jnp.fft.irfft2(X, s=(H, W), axes=(1, 2), norm='ortho')
    y = y.astype(x.dtype)
    return jnp.transpose(y, (0, 3, 1, 2))                        # NCHW


if __name__ == "__main__":
    key = jax.random.PRNGKey(0)
    kx, kw = jax.random.split(key)

    # Small shapes consistent with the module: x (B, dim, H, W),
    # complex_weight (H, W//2+1, dim, 2) with dim=32 (module default).
    B, C, H, W = 2, 32, 16, 16
    x = jax.random.normal(kx, (B, C, H, W), jnp.float32)
    complex_weight = jax.random.normal(kw, (H, W // 2 + 1, C, 2), jnp.float32) * 0.02

    out = global_filter_forward(x, complex_weight)
    out = jax.block_until_ready(out)
    assert out.shape == (B, C, H, W), out.shape

    ref = _ref_global_filter(x, complex_weight)
    # All-f32 DFT-matmul path: tight tolerance (loosen only for bf16 operands).
    np.testing.assert_allclose(np.asarray(out), np.asarray(ref),
                               rtol=2e-3, atol=2e-5)

    print("KERNEL_OK")
</pallas_src>

<mosaic_0001>
module attributes {stable_mosaic.version = 11 : i64} {
  func.func @_global_filter_kernel(%arg0: i32, %arg1: i32, %arg2: memref<1x32x256xf32, #tpu.memory_space<vmem>>, %arg3: memref<32x256xf32, #tpu.memory_space<vmem>>, %arg4: memref<32x256xf32, #tpu.memory_space<vmem>>, %arg5: memref<256x256xf32, #tpu.memory_space<vmem>>, %arg6: memref<256x256xf32, #tpu.memory_space<vmem>>, %arg7: memref<256x256xf32, #tpu.memory_space<vmem>>, %arg8: memref<256x256xf32, #tpu.memory_space<vmem>>, %arg9: memref<1x32x256xf32, #tpu.memory_space<vmem>>) attributes {dimension_semantics = [#tpu.dimension_semantics<parallel>, #tpu.dimension_semantics<parallel>], iteration_bounds = array<i64: 1, 2>, scalar_prefetch = 0 : i64, scratch_operands = 0 : i64, tpu.core_type = #tpu.core_type<tc>, window_params = [{transform_indices = @transform_0, window_bounds = array<i64: 1, 32, 256>}, {transform_indices = @transform_1, window_bounds = array<i64: 32, 256>}, {transform_indices = @transform_2, window_bounds = array<i64: 32, 256>}, {pipeline_mode = #tpu.pipeline_mode<synchronous>, transform_indices = @transform_3, window_bounds = array<i64: 256, 256>}, {pipeline_mode = #tpu.pipeline_mode<synchronous>, transform_indices = @transform_4, window_bounds = array<i64: 256, 256>}, {pipeline_mode = #tpu.pipeline_mode<synchronous>, transform_indices = @transform_5, window_bounds = array<i64: 256, 256>}, {pipeline_mode = #tpu.pipeline_mode<synchronous>, transform_indices = @transform_6, window_bounds = array<i64: 256, 256>}, {transform_indices = @transform_7, window_bounds = array<i64: 1, 32, 256>}]} {
    %c0 = arith.constant 0 : index
    %c0_0 = arith.constant 0 : index
    %c0_1 = arith.constant 0 : index
    %0 = vector.load %arg2[%c0, %c0_0, %c0_1] : memref<1x32x256xf32, #tpu.memory_space<vmem>>, vector<1x32x256xf32>
    %1 = vector.shape_cast %0 : vector<1x32x256xf32> to vector<32x256xf32>
    %c0_2 = arith.constant 0 : index
    %c0_3 = arith.constant 0 : index
    %2 = vector.load %arg5[%c0_2, %c0_3] : memref<256x256xf32, #tpu.memory_space<vmem>>, vector<256x256xf32>
    %cst = arith.constant dense<0.000000e+00> : vector<32x256xf32>
    %3 = tpu.matmul %1, %2, %cst {dimension_numbers = #tpu.dot_dimension_numbers<[1], [0], [0], [1], [0, 0, 1, 1], [], []>} : vector<32x256xf32>, vector<256x256xf32>, vector<32x256xf32> -> vector<32x256xf32>
    %c0_4 = arith.constant 0 : index
    %c0_5 = arith.constant 0 : index
    %4 = vector.load %arg6[%c0_4, %c0_5] : memref<256x256xf32, #tpu.memory_space<vmem>>, vector<256x256xf32>
    %cst_6 = arith.constant dense<0.000000e+00> : vector<32x256xf32>
    %5 = tpu.matmul %1, %4, %cst_6 {dimension_numbers = #tpu.dot_dimension_numbers<[1], [0], [0], [1], [0, 0, 1, 1], [], []>} : vector<32x256xf32>, vector<256x256xf32>, vector<32x256xf32> -> vector<32x256xf32>
    %c0_7 = arith.constant 0 : index
    %c0_8 = arith.constant 0 : index
    %6 = vector.load %arg3[%c0_7, %c0_8] : memref<32x256xf32, #tpu.memory_space<vmem>>, vector<32x256xf32>
    %c0_9 = arith.constant 0 : index
    %c0_10 = arith.constant 0 : index
    %7 = vector.load %arg4[%c0_9, %c0_10] : memref<32x256xf32, #tpu.memory_space<vmem>>, vector<32x256xf32>
    %8 = arith.mulf %3, %6 : vector<32x256xf32>
    %9 = arith.mulf %5, %7 : vector<32x256xf32>
    %10 = arith.subf %8, %9 : vector<32x256xf32>
    %11 = arith.mulf %3, %7 : vector<32x256xf32>
    %12 = arith.mulf %5, %6 : vector<32x256xf32>
    %13 = arith.addf %11, %12 : vector<32x256xf32>
    %c0_11 = arith.constant 0 : index
    %c0_12 = arith.constant 0 : index
    %14 = vector.load %arg7[%c0_11, %c0_12] : memref<256x256xf32, #tpu.memory_space<vmem>>, vector<256x256xf32>
    %cst_13 = arith.constant dense<0.000000e+00> : vector<32x256xf32>
    %15 = tpu.matmul %10, %14, %cst_13 {dimension_numbers = #tpu.dot_dimension_numbers<[1], [0], [0], [1], [0, 0, 1, 1], [], []>} : vector<32x256xf32>, vector<256x256xf32>, vector<32x256xf32> -> vector<32x256xf32>
    %c0_14 = arith.constant 0 : index
    %c0_15 = arith.constant 0 : index
    %16 = vector.load %arg8[%c0_14, %c0_15] : memref<256x256xf32, #tpu.memory_space<vmem>>, vector<256x256xf32>
    %cst_16 = arith.constant dense<0.000000e+00> : vector<32x256xf32>
    %17 = tpu.matmul %13, %16, %cst_16 {dimension_numbers = #tpu.dot_dimension_numbers<[1], [0], [0], [1], [0, 0, 1, 1], [], []>} : vector<32x256xf32>, vector<256x256xf32>, vector<32x256xf32> -> vector<32x256xf32>
    %18 = arith.addf %15, %17 : vector<32x256xf32>
    %c0_17 = arith.constant 0 : index
    %c0_18 = arith.constant 0 : index
    %c0_19 = arith.constant 0 : index
    %19 = vector.load %arg9[%c0_17, %c0_18, %c0_19] : memref<1x32x256xf32, #tpu.memory_space<vmem>>, vector<1x32x256xf32>
    %20 = vector.shape_cast %19 : vector<1x32x256xf32> to vector<32x256xf32>
    %21 = vector.shape_cast %18 : vector<32x256xf32> to vector<1x32x256xf32>
    tpu.vector_store %arg9[%c0_17, %c0_18, %c0_19], %21 {strides = array<i32>} : memref<1x32x256xf32, #tpu.memory_space<vmem>>, vector<1x32x256xf32>,
    return
  }
  func.func @transform_0(%arg0: i32, %arg1: i32) -> (i32, i32, i32) {
    %c0_i32 = arith.constant 0 : i32
    %c0_i32_0 = arith.constant 0 : i32
    return %arg1, %arg0, %c0_i32 : i32, i32, i32
  }
  func.func @transform_1(%arg0: i32, %arg1: i32) -> (i32, i32) {
    %c0_i32 = arith.constant 0 : i32
    %c0_i32_0 = arith.constant 0 : i32
    return %arg0, %c0_i32 : i32, i32
  }
  func.func @transform_2(%arg0: i32, %arg1: i32) -> (i32, i32) {
    %c0_i32 = arith.constant 0 : i32
    %c0_i32_0 = arith.constant 0 : i32
    return %arg0, %c0_i32 : i32, i32
  }
  func.func @transform_3(%arg0: i32, %arg1: i32) -> (i32, i32) {
    %c0_i32 = arith.constant 0 : i32
    %c0_i32_0 = arith.constant 0 : i32
    %c0_i32_1 = arith.constant 0 : i32
    return %c0_i32, %c0_i32_0 : i32, i32
  }
  func.func @transform_4(%arg0: i32, %arg1: i32) -> (i32, i32) {
    %c0_i32 = arith.constant 0 : i32
    %c0_i32_0 = arith.constant 0 : i32
    %c0_i32_1 = arith.constant 0 : i32
    return %c0_i32, %c0_i32_0 : i32, i32
  }
  func.func @transform_5(%arg0: i32, %arg1: i32) -> (i32, i32) {
    %c0_i32 = arith.constant 0 : i32
    %c0_i32_0 = arith.constant 0 : i32
    %c0_i32_1 = arith.constant 0 : i32
    return %c0_i32, %c0_i32_0 : i32, i32
  }
  func.func @transform_6(%arg0: i32, %arg1: i32) -> (i32, i32) {
    %c0_i32 = arith.constant 0 : i32
    %c0_i32_0 = arith.constant 0 : i32
    %c0_i32_1 = arith.constant 0 : i32
    return %c0_i32, %c0_i32_0 : i32, i32
  }
  func.func @transform_7(%arg0: i32, %arg1: i32) -> (i32, i32, i32) {
    %c0_i32 = arith.constant 0 : i32
    %c0_i32_0 = arith.constant 0 : i32
    return %arg1, %arg0, %c0_i32 : i32, i32, i32
  }
}

</mosaic_0001>

<bundles_post_ra>
// kernel: tpu_custom_call.1
= control target key start
LH: loop header
LB: loop body
LE: loop exit
PB: predicated region body
PF: predicated region fallthrough
CT: control target
= control target key end

     0   :  { %s2543_s0 = inlined_call_operand.hbm [shape: f32[2,32,256], index: 0, kind: input, shape index: {}]   ;;  %s2544_s1 = inlined_call_operand.hbm [shape: f32[32,256], index: 1, kind: input, shape index: {}]   ;;  %s2545_s2 = inlined_call_operand.hbm [shape: f32[32,256], index: 2, kind: input, shape index: {}]   ;;  %s2546_s3 = inlined_call_operand.hbm [shape: f32[256,256], index: 3, kind: input, shape index: {}]   ;;  %s2547_s4 = inlined_call_operand.hbm [shape: f32[256,256], index: 4, kind: input, shape index: {}]   ;;  %s2548_s5 = inlined_call_operand.hbm [shape: f32[256,256], index: 5, kind: input, shape index: {}]   ;;  %s2549_s6 = inlined_call_operand.hbm [shape: f32[256,256], index: 6, kind: input, shape index: {}]   ;;  %s2550_s7 = inlined_call_operand.hbm [shape: f32[2,32,256], index: 7, kind: output, shape index: {}]  }
   0x1   :  { %2558 = sst [smem:[#allocation20_spill]] %s2544_s1 }
   0x2   :  { %2559 = sst [smem:[#allocation21_spill]] %s2550_s7 }
   0x3   :  { %12 = vsyncpa [#allocation3], 0 }
   0x4   :  { %14 = vsyncpa [#allocation3 + $0x1], 0 }
   0x5   :  { %15 = vsyncpa [#allocation6], 0 }
   0x6   :  { %16 = vsyncpa [#allocation9], 0 }
   0x7   :  { %17 = vsyncpa [#allocation12], 0 }
   0x8   :  { %18 = vsyncpa [#allocation4], 0 }
   0x9   :  { %20 = vsyncpa [#allocation4 + $0x1], 0  ;;  %s2048_s24 = smov 0   ;;  %s2050_s25 = smov 0  }
   0xa   :  { %s2052_s26 = smov 0   ;;  %s2054_s27 = smov 0  }
   0xb   :  { %s2056_s28 = smov 0   ;;  %s2058_s29 = smov 0  }
   0xc LB: > { %s2551_s30 = sadd.s32 4294967295, %s1994_s29   ;;  %p1284_p0 = scmp.ge.s32.totalorder %s1994_s29, 1  ;;  %s1994_s29 = sphi %s2058_s29, %s26_s29   ;;  %s1990_s28 = sphi %s2056_s28, %s2583_s28   ;;  %s1986_s27 = sphi %s2054_s27, %s2582_s27   ;;  %s1982_s26 = sphi %s2052_s26, %s2581_s26   ;;  %s1978_s25 = sphi %s2050_s25, %s2580_s25   ;;  %s1974_s24 = sphi %s2048_s24, %s2579_s24  }
   0xd   : > { %p2082_p1 = scmp.eq.s32.totalorder %s2551_s30, 0  ;;  %p235_p2 = scmp.lt.s32.totalorder %s1994_s29, 3 }
   0xe   : > { %s1996_s10 = smov [#allocation5]   ;;  %s1997_s13 = smov [#allocation8]  }
   0xf   : > { %s2560_s8 = scalar_select %p2082_p1, 1, 0 }
  0x10   : > { %p2087_p3 = pnand %p1284_p0, %p235_p2  ;;  %s251_s11 = sshll.u32 %s1996_s10, 4  ;;  %s2091_s11 = int_to_ptr.vmem [resolvable:$true] %s251_s11 }
  0x11   : > { %s281_s14 = sshll.u32 %s1997_s13, 4  ;;  %s1998_s15 = smov [#allocation11]   ;;  %s2102_s14 = int_to_ptr.vmem [resolvable:$true] %s281_s14 }
  0x12   : > { %s2561_s9 = scalar_select %p2087_p3, 1, 0 }
  0x13   : > { %p1603_p4 = pneg %p2087_p3  ;;  %s2104_s16 = sshll.u32 %s1998_s15, 4  ;;  %s308_s16 = int_to_ptr.vmem [resolvable:$true] %s2104_s16 }
  0x14   : > { %s2563_s1 = sld [smem:[#allocation20_spill]] }
  0x15   : > { %p2098_p6 = pnand %p1603_p4, %p2082_p1 }
  0x17   : > { %p2114_p8 = pneg %p2098_p6 }
  0x1a   : > { %s1702_s19 = scalar_lea.hbm %s2563_s1, 1024 }
  0x1b   : > { %p1703_p7 = scmp.ne.s32.totalorder %s2563_s1, %s1702_s19  ;;  %p1709_p11 = scmp.lt.u32.totalorder %s1702_s19, %s2563_s1 }
  0x1d   : > { %p1705_p9 = pnand %p2114_p8, %p1703_p7 }
  0x1f   : > { %p1706_p10 = pneg %p1705_p9 }
  0x21   : > { %p1711_p12 = pnand %p1709_p11, %p1706_p10 }
  0x23   : > { %1714 = shalt.err (!%p1711_p12)
}
  0x24   : > { %s1715_s13 = scalar_lea.vmem %s2091_s11, 1024  ;;  %p1723_p4 = scmp.lt.s32.totalorder %s2091_s11, %s2091_s11 }
  0x25   : > { %p1716_p13 = scmp.ne.s32.totalorder %s2091_s11, %s1715_s13  ;;  %p1724_p5 = scmp.lt.s32.totalorder %s1715_s13, %s1715_s13 }
  0x27   : > { %p1718_p0 = pnand %p1716_p13, %p2114_p8  ;;  %p1725_p7 = por %p1724_p5, %p1723_p4 }
  0x29   : > { %p1719_p2 = pneg %p1718_p0 }
  0x2b   : > { %p1726_p9 = pnand %p1725_p7, %p1719_p2 }
  0x2d   : > { %1729 = shalt.err (!%p1726_p9)
}
  0x2e   : > { %s2556_s15 = smov 256   ;;  %s2000_s17 = smov 16  }
  0x2f   : > { %1606 = dma.hbm_to_vmem [thread:$0]  (!%p2098_p6), %s2563_s1, 1024, %s2091_s11, [#allocation6], %s2556_s15, %s2556_s15, %s2000_s17  }
  0x30   : > { %s1730_s23 = scalar_lea.hbm %s2546_s3, 8192 }
  0x31   : > { %p1731_p5 = scmp.ne.s32.totalorder %s2546_s3, %s1730_s23  ;;  %p1737_p12 = scmp.lt.u32.totalorder %s1730_s23, %s2546_s3 }
  0x33   : > { %p1733_p10 = pnand %p1731_p5, %p2114_p8 }
  0x35   : > { %p1734_p11 = pneg %p1733_p10 }
  0x37   : > { %p1739_p13 = pnand %p1737_p12, %p1734_p11 }
  0x39   : > { %1742 = shalt.err (!%p1739_p13)
}
  0x3a   : > { %s1743_s11 = scalar_lea.vmem %s2102_s14, 8192  ;;  %p1751_p7 = scmp.lt.s32.totalorder %s2102_s14, %s2102_s14 }
  0x3b   : > { %p1744_p0 = scmp.ne.s32.totalorder %s2102_s14, %s1743_s11  ;;  %p1752_p9 = scmp.lt.s32.totalorder %s1743_s11, %s1743_s11 }
  0x3d   : > { %p1746_p2 = pnand %p1744_p0, %p2114_p8  ;;  %p1753_p5 = por %p1752_p9, %p1751_p7 }
  0x3f   : > { %p1747_p4 = pneg %p1746_p2 }
  0x41   : > { %p1754_p10 = pnand %p1753_p5, %p1747_p4 }
  0x43   : > { %1757 = shalt.err (!%p1754_p10)
}
  0x44   : > { %1612 = dma.hbm_to_vmem [thread:$0]  (!%p2098_p6), %s2546_s3, 8192, %s2102_s14, [#allocation9], %s2556_s15, %s2556_s15, %s2000_s17  }
  0x45   : > { %s1758_s20 = scalar_lea.hbm %s2548_s5, 8192 }
  0x46   : > { %p1759_p11 = scmp.ne.s32.totalorder %s2548_s5, %s1758_s20  ;;  %p1765_p0 = scmp.lt.u32.totalorder %s1758_s20, %s2548_s5 }
  0x48   : > { %p1761_p12 = pnand %p1759_p11, %p2114_p8 }
  0x4a   : > { %p1762_p13 = pneg %p1761_p12 }
  0x4c   : > { %p1767_p2 = pnand %p1765_p0, %p1762_p13 }
  0x4e   : > { %1770 = shalt.err (!%p1767_p2)
}
  0x4f   : > { %s1771_s11 = scalar_lea.vmem %s308_s16, 8192  ;;  %p1779_p5 = scmp.lt.s32.totalorder %s308_s16, %s308_s16 }
  0x50   : > { %p1772_p4 = scmp.ne.s32.totalorder %s308_s16, %s1771_s11  ;;  %p1780_p10 = scmp.lt.s32.totalorder %s1771_s11, %s1771_s11 }
  0x52   : > { %p1774_p7 = pnand %p1772_p4, %p2114_p8  ;;  %p1781_p3 = por %p1780_p10, %p1779_p5 }
  0x54   : > { %p1775_p9 = pneg %p1774_p7 }
  0x56   : > { %p1782_p1 = pnand %p1781_p3, %p1775_p9 }
  0x58   : > { %1785 = shalt.err (!%p1782_p1)
}
  0x59   : > { %1618 = dma.hbm_to_vmem [thread:$0]  (!%p2098_p6), %s2548_s5, 8192, %s308_s16, [#allocation12], %s2556_s15, %s2556_s15, %s2000_s17  }
  0x5a   : > { %s2001_s30 = smov [#allocation7]   ;;  %s2002_s19 = smov [#allocation10]  }
  0x5b   : > { %s268_s18 = sshll.u32 %s2001_s30, 4  ;;  %s294_s20 = sshll.u32 %s2002_s19, 4  ;;  %s269_s18 = int_to_ptr.vmem [resolvable:$true] %s268_s18  ;;  %s295_s20 = int_to_ptr.vmem [resolvable:$true] %s294_s20 }
  0x5c   : > { %s1786_s10 = scalar_lea.hbm %s2545_s2, 1024 }
  0x5d   : > { %p1787_p1 = scmp.ne.s32.totalorder %s2545_s2, %s1786_s10  ;;  %p1793_p12 = scmp.lt.u32.totalorder %s1786_s10, %s2545_s2 }
  0x5f   : > { %p1789_p3 = pnand %p1787_p1, %p2114_p8 }
  0x61   : > { %p1790_p11 = pneg %p1789_p3 }
  0x63   : > { %p1795_p13 = pnand %p1793_p12, %p1790_p11 }
  0x65   : > { %1798 = shalt.err (!%p1795_p13)
}
  0x66   : > { %s1799_s16 = scalar_lea.vmem %s269_s18, 1024  ;;  %p1807_p7 = scmp.lt.s32.totalorder %s269_s18, %s269_s18 }
  0x67   : > { %p1800_p0 = scmp.ne.s32.totalorder %s269_s18, %s1799_s16  ;;  %p1808_p9 = scmp.lt.s32.totalorder %s1799_s16, %s1799_s16 }
  0x69   : > { %p1802_p2 = pnand %p1800_p0, %p2114_p8  ;;  %p1809_p5 = por %p1808_p9, %p1807_p7 }
  0x6b   : > { %p1803_p4 = pneg %p1802_p2 }
  0x6d   : > { %p1810_p10 = pnand %p1809_p5, %p1803_p4 }
  0x6f   : > { %1813 = shalt.err (!%p1810_p10)
}
  0x70   : > { %1609 = dma.hbm_to_vmem [thread:$0]  (!%p2098_p6), %s2545_s2, 1024, %s269_s18, [#allocation6], %s2556_s15, %s2556_s15, %s2000_s17  }
  0x71   : > { %s1814_s21 = scalar_lea.hbm %s2547_s4, 8192 }
  0x72   : > { %p1815_p1 = scmp.ne.s32.totalorder %s2547_s4, %s1814_s21  ;;  %p1821_p12 = scmp.lt.u32.totalorder %s1814_s21, %s2547_s4 }
  0x74   : > { %p1817_p3 = pnand %p1815_p1, %p2114_p8 }
  0x76   : > { %p1818_p11 = pneg %p1817_p3 }
  0x78   : > { %p1823_p13 = pnand %p1821_p12, %p1818_p11 }
  0x7a   : > { %1826 = shalt.err (!%p1823_p13)
}
  0x7b   : > { %s1827_s14 = scalar_lea.vmem %s295_s20, 8192  ;;  %p1835_p7 = scmp.lt.s32.totalorder %s295_s20, %s295_s20 }
  0x7c   : > { %p1828_p0 = scmp.ne.s32.totalorder %s295_s20, %s1827_s14  ;;  %p1836_p9 = scmp.lt.s32.totalorder %s1827_s14, %s1827_s14 }
  0x7e   : > { %p1830_p2 = pnand %p1828_p0, %p2114_p8  ;;  %p1837_p5 = por %p1836_p9, %p1835_p7 }
  0x80   : > { %p1831_p4 = pneg %p1830_p2 }
  0x82   : > { %p1838_p10 = pnand %p1837_p5, %p1831_p4 }
  0x84   : > { %1841 = shalt.err (!%p1838_p10)
}
  0x85   : > { %1615 = dma.hbm_to_vmem [thread:$0]  (!%p2098_p6), %s2547_s4, 8192, %s295_s20, [#allocation9], %s2556_s15, %s2556_s15, %s2000_s17  }
  0x86   : > { %s2003_s1 = smov [#allocation13]   ;;  %s1842_s21 = scalar_lea.hbm %s2549_s6, 8192 }
  0x87   : > { %s320_s7 = sshll.u32 %s2003_s1, 4  ;;  %p1843_p1 = scmp.ne.s32.totalorder %s2549_s6, %s1842_s21  ;;  %s321_s7 = int_to_ptr.vmem [resolvable:$true] %s320_s7 }
  0x88   : > { %p1849_p12 = scmp.lt.u32.totalorder %s1842_s21, %s2549_s6 }
  0x89   : > { %p1845_p3 = pnand %p1843_p1, %p2114_p8 }
  0x8b   : > { %p1846_p11 = pneg %p1845_p3 }
  0x8d   : > { %p1851_p13 = pnand %p1849_p12, %p1846_p11 }
  0x8f   : > { %1854 = shalt.err (!%p1851_p13)
}
  0x90   : > { %s1855_s20 = scalar_lea.vmem %s321_s7, 8192  ;;  %p1863_p7 = scmp.lt.s32.totalorder %s321_s7, %s321_s7 }
  0x91   : > { %p1856_p0 = scmp.ne.s32.totalorder %s321_s7, %s1855_s20  ;;  %p1864_p9 = scmp.lt.s32.totalorder %s1855_s20, %s1855_s20 }
  0x93   : > { %p1858_p2 = pnand %p1856_p0, %p2114_p8  ;;  %p1865_p5 = por %p1864_p9, %p1863_p7 }
  0x95   : > { %p1859_p4 = pneg %p1858_p2 }
  0x97   : > { %p1866_p10 = pnand %p1865_p5, %p1859_p4 }
  0x99   : > { %1869 = shalt.err (!%p1866_p10)
}
  0x9a   : > { %1621 = dma.hbm_to_vmem [thread:$0]  (!%p2098_p6), %s2549_s6, 8192, %s321_s7, [#allocation12], %s2556_s15, %s2556_s15, %s2000_s17  }
  0x9b   : > { %s1283_s12 = sadd.s32 4294967294, %s1994_s29   ;;  %s35_s22 = sadd.s32 1, %s1990_s28 }
  0x9c   : > { %p36_p8 = scmp.ge.s32.totalorder %s35_s22, 2  ;;  %s47_s16 = sadd.s32 1, %s1982_s26 }
  0x9d   : > { %p54_p1 = scmp.ne.s32.totalorder %s1982_s26, %s1978_s25  ;;  %p55_p3 = scmp.eq.s32.totalorder %s1994_s29, 0 }
  0x9e   : > { %s2585_s22 = smov (%p36_p8, %s35_s22), 0  ;;  %p60_p12 = scmp.ne.s32.totalorder %s1978_s25, %s1974_s24 }
  0x9f   : > { %p2257_p11 = por %p55_p3, %p54_p1  ;;  %s42_s7 = ssub.s32 %s1990_s28, %s2585_s22 }
  0xa0   : > { %s2566_s30 = sadd.s32 4294967295, %s1994_s29   ;;  %p45_p13 = scmp.eq.s32.totalorder %s42_s7, 0 }
  0xa1   : > { %p222_p6 = scmp.eq.s32.totalorder %s2566_s30, 1  ;;  %p2567_p0 = scmp.ne.s32.totalorder %s2560_s8, 0 }
  0xa2   : > { %p228_p7 = scmp.eq.s32.totalorder %s1283_s12, 1  ;;  %p1636_p5 = scmp.lt.s32.totalorder %s1994_s29, 2 }
  0xa3   : > { %p2269_p2 = por %p2567_p0, %p60_p12  ;;  %p2273_p4 = por %p222_p6, %p54_p1 }
  0xa4   : > { %s2278_s23 = scalar_select %p45_p13, %s1982_s26, %s47_s16  }
  0xa5   : > { %s2569_s21 = scalar_select %p2273_p4, 1, 0 }
  0xa6   : > { %p2280_p9 = por %p228_p7, %p60_p12  ;;  %s334_s13 = sand.u32 1, %s1982_s26  }
  0xa7   : > { %s1309_s11 = sshll.u32 %s1990_s28, 10  ;;  %s1292_s20 = sshll.u32 %s334_s13, 6 }
  0xa8   : > { %s2570_s10 = scalar_select %p2280_p9, 1, 0 }
  0xa9   : > { %s2290_s7 = scalar_lea.hbm %s2543_s0, %s1309_s11  ;;  %s338_s12 = scalar_lea.vmem [#allocation2], %s1292_s20 }
  0xaa   : > { %s348_s16 = sshll.u32 %s338_s12, 4  ;;  %p2294_p10 = pnand %p1636_p5, %p2257_p11  ;;  %s2298_s16 = int_to_ptr.vmem [resolvable:$true] %s348_s16 }
  0xab   : > { %s2300_s15 = scalar_lea.sflag [#allocation3], %s334_s13  ;;  %s1870_s14 = scalar_lea.hbm %s2290_s7, 1024 }
  0xac   : > { %p1871_p8 = scmp.ne.s32.totalorder %s2290_s7, %s1870_s14  ;;  %p1872_p1 = pneg %p2294_p10 }
  0xad   : > { %s1875_s20 = scalar_lea.hbm %s2543_s0, 2048  ;;  %p1876_p11 = scmp.lt.u32.totalorder %s2290_s7, %s2543_s0 }
  0xae   : > { %p1873_p3 = pnand %p1872_p1, %p1871_p8  ;;  %p1877_p6 = scmp.lt.u32.totalorder %s1875_s20, %s1870_s14 }
  0xaf   : > { %p1879_p0 = scmp.lt.u32.totalorder %s1870_s14, %s2290_s7 }
  0xb0   : > { %p1874_p12 = pneg %p1873_p3  ;;  %p1878_p13 = por %p1877_p6, %p1876_p11 }
  0xb2   : > { %p1880_p7 = por %p1879_p0, %p1878_p13 }
  0xb4   : > { %p1881_p5 = pnand %p1880_p7, %p1874_p12 }
  0xb6   : > { %1884 = shalt.err (!%p1881_p5)
}
  0xb7   : > { %s1885_s13 = scalar_lea.vmem %s2298_s16, 1024  ;;  %s2004_s11 = smov [#allocation2]  }
  0xb8   : > { %p1886_p8 = scmp.ne.s32.totalorder %s2298_s16, %s1885_s13  ;;  %s1890_s1 = sshll.u32 %s2004_s11, 4  ;;  %s1891_s1 = int_to_ptr.vmem [resolvable:$false] %s1890_s1 }
  0xb9   : > { %s1892_s18 = scalar_lea.vmem %s1891_s1, 2048  ;;  %p1893_p4 = scmp.lt.s32.totalorder %s2298_s16, %s1891_s1 }
  0xba   : > { %p1888_p3 = pnand %p1886_p8, %p1872_p1  ;;  %p1894_p11 = scmp.lt.s32.totalorder %s1892_s18, %s1885_s13 }
  0xbc   : > { %p1889_p9 = pneg %p1888_p3  ;;  %p1895_p6 = por %p1894_p11, %p1893_p4 }
  0xbe   : > { %p1896_p13 = pnand %p1895_p6, %p1889_p9 }
  0xc0   : > { %1899 = shalt.err (!%p1896_p13)
}
  0xc1   : > { %s2572_s14 = smov 256   ;;  %p2573_p1 = scmp.ne.s32.totalorder %s2561_s9, 0 }
  0xc2   : > { %1625 = dma.hbm_to_vmem [thread:$0]  (!%p2294_p10), %s2290_s7, 1024, %s2298_s16, %s2300_s15, %s2572_s14, %s2572_s14, %s2000_s17  }
  0xc3   : > { %360 = sbr.rel (%p2573_p1) target bundleno = 863 (0x35f), region = 48  ;;  %s2334_s20 = sand.u32 (!%p2573_p1), 1, %s1978_s25  }
  0xc4   : > { %s1296_s12 = sshll.u32 (!%p2573_p1), %s2334_s20, 6  ;;  %s363_s13 = scalar_lea.sflag (!%p2573_p1), [#allocation3], %s2334_s20 }
  0xc5   : > { %s2340_s30 = scalar_lea.vmem (!%p2573_p1), [#allocation2], %s1296_s12 }
  0xca   : > { %1953 = dma.done.wait (%p2269_p2), %s363_s13, 1024  }
  0xcb   : > { %1955 = vsyncadd (%p2269_p2), %s363_s13, 4294966272  ;;  %p2574_p4 = scmp.ne.s32.totalorder %s2560_s8, 0 }
  0xcd   : > { %1957 = dma.done.wait (%p2574_p4), [#allocation6], 2048  }
  0xce   : > { %1959 = vsyncadd (%p2574_p4), [#allocation6], 4294965248 }
  0xcf   : > { %1961 = dma.done.wait (%p2574_p4), [#allocation9], 16384  }
  0xd0   : > { %1963 = vsyncadd (%p2574_p4), [#allocation9], 4294950912 }
  0xd1   : > { %1965 = dma.done.wait (%p2574_p4), [#allocation12], 16384  }
  0xd2   : > { %1967 = vsyncadd (%p2574_p4), [#allocation12], 4294950912  ;;  %v434_v0 = vld [vmem:[#allocation8 + $0x8] sm:$0xff]  ;;  %v436_v1 = vld [vmem:[#allocation8 + $0x18] sm:$0xff]  ;;  %s420_s8 = scalar_lea.vmem [#allocation14], %s1296_s12  ;;  %s1310_s15 = sshll.u32 %s1986_s27, 10 }
  0xd3   : > { %v433_v2 = vld [vmem:[#allocation8] sm:$0xff]  ;;  %v1311_v3 = vpack.c.bf16 %v436_v1, %v434_v0  ;;  %v435_v4 = vld [vmem:[#allocation8 + $0x10] sm:$0xff]  ;;  %v438_v5 = vld [vmem:[#allocation8 + $0x28] sm:$0xff]  ;;  %s1134_s9 = sshll.u32 %s420_s8, 4  ;;  %s2575_s7 = sld [smem:[#allocation21_spill]]  ;;  %s2489_s9 = int_to_ptr.vmem [resolvable:$true] %s1134_s9 }
  0xd4   : > { %v440_v6 = vld [vmem:[#allocation8 + $0x38] sm:$0xff]  ;;  %v1313_v7 = vpack.c.bf16 %v435_v4, %v433_v2  ;;  %v437_v9 = vld [vmem:[#allocation8 + $0x20] sm:$0xff]  ;;  %v439_v10 = vld [vmem:[#allocation8 + $0x30] sm:$0xff]  ;;  %s1118_s11 = scalar_lea.sflag [#allocation4], %s2334_s20  ;;  %s1900_s1 = scalar_lea.vmem %s2489_s9, 1024 }
  0xd5   : > { %v1315_v8 = vpack.c.bf16 %v440_v6, %v438_v5  ;;  %v442_v11 = vld [vmem:[#allocation8 + $0x48] sm:$0xff]  ;;  %1312 = vmatprep.subr.bf16.mxu1 %v1311_v3  ;;  %v444_v12 = vld [vmem:[#allocation8 + $0x58] sm:$0xff]  ;;  %v1317_v13 = vpack.c.bf16 %v439_v10, %v437_v9  ;;  %v441_v15 = vld [vmem:[#allocation8 + $0x40] sm:$0xff]  ;;  %p1901_p2 = scmp.ne.s32.totalorder %s2489_s9, %s1900_s1  ;;  %p2576_p9 = scmp.ne.s32.totalorder %s2569_s21, 0 }
  0xd6   : > { %1314 = vmatpush1.bf16.msra.mxu1 %v1313_v7  ;;  %v1319_v14 = vpack.c.bf16 %v444_v12, %v442_v11  ;;  %v443_v16 = vld [vmem:[#allocation8 + $0x50] sm:$0xff]  ;;  %v446_v17 = vld [vmem:[#allocation8 + $0x68] sm:$0xff]  ;;  %v448_v18 = vld [vmem:[#allocation8 + $0x78] sm:$0xff]  ;;  %s2005_s27 = smov [#allocation14]  }
  0xd7   : > { %1316 = vmatprep.subr.bf16.mxu1 %v1315_v8  ;;  %v1321_v19 = vpack.c.bf16 %v443_v16, %v441_v15  ;;  %v1323_v20 = vpack.c.bf16 %v448_v18, %v446_v17  ;;  %v445_v21 = vld [vmem:[#allocation8 + $0x60] sm:$0xff]  ;;  %v447_v22 = vld [vmem:[#allocation8 + $0x70] sm:$0xff]  ;;  %v450_v23 = vld [vmem:[#allocation8 + $0x88] sm:$0xff]  ;;  %p1902_p10 = pnand %p1901_p2, %p2576_p9  ;;  %s1904_s18 = sshll.u32 %s2005_s27, 4  ;;  %s1905_s18 = int_to_ptr.vmem [resolvable:$false] %s1904_s18 }
  0xd8   : > { %v452_v24 = vld [vmem:[#allocation8 + $0x98] sm:$0xff]  ;;  %v1325_v25 = vpack.c.bf16 %v447_v22, %v445_v21  ;;  %v449_v27 = vld [vmem:[#allocation8 + $0x80] sm:$0xff]  ;;  %v451_v28 = vld [vmem:[#allocation8 + $0x90] sm:$0xff]  ;;  %s1906_s14 = scalar_lea.vmem %s1905_s18, 2048  ;;  %p1907_p0 = scmp.lt.s32.totalorder %s2489_s9, %s1905_s18 }
  0xd9   : > { %v1327_v26 = vpack.c.bf16 %v452_v24, %v450_v23  ;;  %v454_v29 = vld [vmem:[#allocation8 + $0xa8] sm:$0xff]  ;;  %v456_v30 = vld [vmem:[#allocation8 + $0xb8] sm:$0xff]  ;;  %v1329_v31 = vpack.c.bf16 %v451_v28, %v449_v27  ;;  %v453_v33 = vld [vmem:[#allocation8 + $0xa0] sm:$0xff]  ;;  %s2494_s16 = scalar_lea.hbm %s2575_s7, %s1310_s15  ;;  %p1903_p12 = pneg %p1902_p10 }
  0xda   : > { %1318 = vmatpush1.bf16.msra.mxu1 %v1317_v13  ;;  %v1331_v32 = vpack.c.bf16 %v456_v30, %v454_v29  ;;  %v455_v34 = vld [vmem:[#allocation8 + $0xb0] sm:$0xff]  ;;  %v458_v35 = vld [vmem:[#allocation8 + $0xc8] sm:$0xff]  ;;  %v460_v36 = vld [vmem:[#allocation8 + $0xd8] sm:$0xff]  ;;  %p1908_p7 = scmp.lt.s32.totalorder %s1906_s14, %s1900_s1 }
  0xdb   : > { %1320 = vmatprep.subr.bf16.mxu1 %v1319_v14  ;;  %v1333_v37 = vpack.c.bf16 %v455_v34, %v453_v33  ;;  %v1335_v38 = vpack.c.bf16 %v460_v36, %v458_v35  ;;  %v457_v39 = vld [vmem:[#allocation8 + $0xc0] sm:$0xff]  ;;  %v459_v40 = vld [vmem:[#allocation8 + $0xd0] sm:$0xff]  ;;  %v2359_v41 = vld [vmem:[%s2340_s30 + $0x8] sm:$0xff] }
  0xdc   : > { %v462_v42 = vld [vmem:[#allocation8 + $0xe8] sm:$0xff]  ;;  %v464_v43 = vld [vmem:[#allocation8 + $0xf8] sm:$0xff]  ;;  %561 = vmatprep.mubr.f32.mxu1 %v2359_v41  ;;  %v1337_v44 = vpack.c.bf16 %v459_v40, %v457_v39  ;;  %v461_v46 = vld [vmem:[#allocation8 + $0xe0] sm:$0xff]  ;;  %p1909_p5 = por %p1908_p7, %p1907_p0 }
  0xdd   : > { %v1339_v45 = vpack.c.bf16 %v464_v43, %v462_v42  ;;  %v463_v47 = vld [vmem:[#allocation8 + $0xf0] sm:$0xff]  ;;  %v466_v48 = vld [vmem:[#allocation8 + $0x108] sm:$0xff]  ;;  %v468_v49 = vld [vmem:[#allocation8 + $0x118] sm:$0xff] }
  0xde   : > { %1322 = vmatpush1.bf16.msra.mxu1 %v1321_v19  ;;  %v1341_v50 = vpack.c.bf16 %v463_v47, %v461_v46  ;;  %v1343_v51 = vpack.c.bf16 %v468_v49, %v466_v48  ;;  %v465_v52 = vld [vmem:[#allocation8 + $0x100] sm:$0xff]  ;;  %v467_v53 = vld [vmem:[#allocation8 + $0x110] sm:$0xff]  ;;  %v470_v54 = vld [vmem:[#allocation8 + $0x128] sm:$0xff]  ;;  %p1910_p8 = pnand %p1909_p5, %p1903_p12 }
  0xdf   : > { %1324 = vmatprep.subr.bf16.mxu1 %v1323_v20  ;;  %v472_v55 = vld [vmem:[#allocation8 + $0x138] sm:$0xff]  ;;  %v1345_v56 = vpack.c.bf16 %v467_v53, %v465_v52  ;;  %v469_v58 = vld [vmem:[#allocation8 + $0x120] sm:$0xff]  ;;  %v471_v59 = vld [vmem:[#allocation8 + $0x130] sm:$0xff] }
  0xe0   : > { %v1347_v57 = vpack.c.bf16 %v472_v55, %v470_v54  ;;  %v474_v60 = vld [vmem:[#allocation8 + $0x148] sm:$0xff]  ;;  %v476_v61 = vld [vmem:[#allocation8 + $0x158] sm:$0xff]  ;;  %v1349_v62 = vpack.c.bf16 %v471_v59, %v469_v58  ;;  %v473_v0 = vld [vmem:[#allocation8 + $0x140] sm:$0xff] }
  0xe1   : > { %v1351_v63 = vpack.c.bf16 %v476_v61, %v474_v60  ;;  %v475_v1 = vld [vmem:[#allocation8 + $0x150] sm:$0xff]  ;;  %v478_v2 = vld [vmem:[#allocation8 + $0x168] sm:$0xff]  ;;  %v480_v3 = vld [vmem:[#allocation8 + $0x178] sm:$0xff] }
  0xe2   : > { %1326 = vmatpush1.bf16.msra.mxu1 %v1325_v25  ;;  %v1353_v4 = vpack.c.bf16 %v475_v1, %v473_v0  ;;  %v1355_v5 = vpack.c.bf16 %v480_v3, %v478_v2  ;;  %v477_v6 = vld [vmem:[#allocation8 + $0x160] sm:$0xff]  ;;  %v479_v7 = vld [vmem:[#allocation8 + $0x170] sm:$0xff]  ;;  %v482_v8 = vld [vmem:[#allocation8 + $0x188] sm:$0xff] }
  0xe3   : > { %1328 = vmatprep.subr.bf16.mxu1 %v1327_v26  ;;  %v484_v9 = vld [vmem:[#allocation8 + $0x198] sm:$0xff]  ;;  %v1357_v10 = vpack.c.bf16 %v479_v7, %v477_v6  ;;  %v481_v12 = vld [vmem:[#allocation8 + $0x180] sm:$0xff]  ;;  %v483_v13 = vld [vmem:[#allocation8 + $0x190] sm:$0xff] }
  0xe4   : > { %v1359_v11 = vpack.c.bf16 %v484_v9, %v482_v8  ;;  %v486_v14 = vld [vmem:[#allocation8 + $0x1a8] sm:$0xff]  ;;  %v488_v15 = vld [vmem:[#allocation8 + $0x1b8] sm:$0xff]  ;;  %v1361_v16 = vpack.c.bf16 %v483_v13, %v481_v12  ;;  %v485_v18 = vld [vmem:[#allocation8 + $0x1a0] sm:$0xff] }
  0xe5   : > { %v1363_v17 = vpack.c.bf16 %v488_v15, %v486_v14  ;;  %v487_v19 = vld [vmem:[#allocation8 + $0x1b0] sm:$0xff]  ;;  %v490_v20 = vld [vmem:[#allocation8 + $0x1c8] sm:$0xff]  ;;  %v492_v21 = vld [vmem:[#allocation8 + $0x1d8] sm:$0xff] }
  0xe6   : > { %1330 = vmatpush1.bf16.msra.mxu1 %v1329_v31  ;;  %v1365_v22 = vpack.c.bf16 %v487_v19, %v485_v18  ;;  %v1367_v23 = vpack.c.bf16 %v492_v21, %v490_v20  ;;  %v489_v24 = vld [vmem:[#allocation8 + $0x1c0] sm:$0xff]  ;;  %v491_v25 = vld [vmem:[#allocation8 + $0x1d0] sm:$0xff]  ;;  %v494_v26 = vld [vmem:[#allocation8 + $0x1e8] sm:$0xff] }
  0xe7   : > { %1332 = vmatprep.subr.bf16.mxu1 %v1331_v32  ;;  %v496_v27 = vld [vmem:[#allocation8 + $0x1f8] sm:$0xff]  ;;  %v1369_v28 = vpack.c.bf16 %v491_v25, %v489_v24  ;;  %v493_v30 = vld [vmem:[#allocation8 + $0x1e0] sm:$0xff]  ;;  %v495_v31 = vld [vmem:[#allocation8 + $0x1f0] sm:$0xff] }
  0xe8   : > { %v1371_v29 = vpack.c.bf16 %v496_v27, %v494_v26  ;;  %v587_v32 = vld [vmem:[#allocation10 + $0x8] sm:$0xff]  ;;  %v589_v33 = vld [vmem:[#allocation10 + $0x18] sm:$0xff]  ;;  %v1373_v34 = vpack.c.bf16 %v495_v31, %v493_v30  ;;  %v586_v36 = vld [vmem:[#allocation10] sm:$0xff] }
  0xe9   : > { %v1375_v35 = vpack.c.bf16 %v589_v33, %v587_v32  ;;  %v593_v39 = vld [vmem:[#allocation10 + $0x38] sm:$0xff]  ;;  %v2363_v40 = vld [vmem:[%s2340_s30] sm:$0xff]  ;;  %v595_v47 = vld [vmem:[#allocation10 + $0x48] sm:$0xff] }
  0xea   : > { %1334 = vmatpush1.bf16.msra.mxu1 %v1333_v37  ;;  %v588_v37 = vld [vmem:[#allocation10 + $0x10] sm:$0xff]  ;;  %v2366_v46 = vld [vmem:[%s2340_s30 + $0x18] sm:$0xff]  ;;  %v594_v52 = vld [vmem:[#allocation10 + $0x40] sm:$0xff] }
  0xeb   : > { %1336 = vmatprep.subr.bf16.mxu1 %v1335_v38  ;;  %v591_v38 = vld [vmem:[#allocation10 + $0x28] sm:$0xff]  ;;  %v1377_v42 = vpack.c.bf16 %v588_v37, %v586_v36  ;;  %v597_v48 = vld [vmem:[#allocation10 + $0x58] sm:$0xff]  ;;  %v596_v53 = vld [vmem:[#allocation10 + $0x50] sm:$0xff] }
  0xec   : > { %v1379_v43 = vpack.c.bf16 %v593_v39, %v591_v38  ;;  %v2374_v54 = vld [vmem:[%s2340_s30 + $0x28] sm:$0xff]  ;;  %v2379_v58 = vld [vmem:[%s2340_s30 + $0x20] sm:$0xff]  ;;  %v600_v61 = vld [vmem:[#allocation10 + $0x70] sm:$0xff] }
  0xed   : > { %v599_v55 = vld [vmem:[#allocation10 + $0x68] sm:$0xff]  ;;  %v598_v60 = vld [vmem:[#allocation10 + $0x60] sm:$0xff]  ;;  %v605_v0 = vld [vmem:[#allocation10 + $0x98] sm:$0xff] }
  0xee   : > { %1338 = vmatpush1.bf16.msra.mxu1 %v1337_v44  ;;  %v590_v44 = vld [vmem:[#allocation10 + $0x20] sm:$0xff]  ;;  %v1389_v1 = vpack.c.bf16 %v600_v61, %v598_v60  ;;  %v2387_v2 = vld [vmem:[%s2340_s30 + $0x30] sm:$0xff]  ;;  %v607_v6 = vld [vmem:[#allocation10 + $0xa8] sm:$0xff] }
  0xef   : > { %1340 = vmatprep.subr.bf16.mxu1 %v1339_v45  ;;  %v592_v45 = vld [vmem:[#allocation10 + $0x30] sm:$0xff]  ;;  %v609_v7 = vld [vmem:[#allocation10 + $0xb8] sm:$0xff]  ;;  %v611_v12 = vld [vmem:[#allocation10 + $0xc8] sm:$0xff] }
  0xf0   : > { %v1381_v49 = vpack.c.bf16 %v592_v45, %v590_v44  ;;  %v1395_v9 = vpack.c.bf16 %v609_v7, %v607_v6  ;;  %v613_v13 = vld [vmem:[#allocation10 + $0xd8] sm:$0xff]  ;;  %v615_v18 = vld [vmem:[#allocation10 + $0xe8] sm:$0xff]  ;;  %v618_v27 = vld [vmem:[#allocation10 + $0x100] sm:$0xff] }
  0xf1   : > { %v1399_v15 = vpack.c.bf16 %v613_v13, %v611_v12  ;;  %v617_v19 = vld [vmem:[#allocation10 + $0xf8] sm:$0xff]  ;;  %v622_v33 = vld [vmem:[#allocation10 + $0x120] sm:$0xff] }
  0xf2   : > { %1342 = vmatpush1.bf16.msra.mxu1 %v1341_v50  ;;  %v2371_v50 = vld [vmem:[%s2340_s30 + $0x10] sm:$0xff]  ;;  %v1403_v21 = vpack.c.bf16 %v617_v19, %v615_v18  ;;  %v621_v24 = vld [vmem:[#allocation10 + $0x118] sm:$0xff]  ;;  %v626_v39 = vld [vmem:[#allocation10 + $0x140] sm:$0xff] }
  0xf3   : > { %1344 = vmatprep.subr.bf16.mxu1 %v1343_v51  ;;  %v1383_v51 = vpack.c.bf16 %v597_v48, %v595_v47  ;;  %v625_v30 = vld [vmem:[#allocation10 + $0x138] sm:$0xff]  ;;  %v630_v48 = vld [vmem:[#allocation10 + $0x160] sm:$0xff] }
  0xf4   : > { %v629_v36 = vld [vmem:[#allocation10 + $0x158] sm:$0xff]  ;;  %v642_v7 = vld [vmem:[#allocation10 + $0x1c0] sm:$0xff] }
  0xf5   : > { %v633_v44 = vld [vmem:[#allocation10 + $0x178] sm:$0xff]  ;;  %v646_v13 = vld [vmem:[#allocation10 + $0x1e0] sm:$0xff] }
  0xf6   : > { %1346 = vmatpush1.bf16.msra.mxu1 %v1345_v56  ;;  %v601_v56 = vld [vmem:[#allocation10 + $0x78] sm:$0xff]  ;;  %v867_v18 = vld [vmem:[#allocation13] sm:$0xff] }
  0xf7   : > { %1348 = vmatprep.subr.bf16.mxu1 %v1347_v57  ;;  %v1385_v57 = vpack.c.bf16 %v596_v53, %v594_v52  ;;  %v1387_v59 = vpack.c.bf16 %v601_v56, %v599_v55  ;;  %v637_v52 = vld [vmem:[#allocation10 + $0x198] sm:$0xff]  ;;  %v634_v56 = vld [vmem:[#allocation10 + $0x180] sm:$0xff] }
  0xf8   : > { %v641_v60 = vld [vmem:[#allocation10 + $0x1b8] sm:$0xff] }
  0xfa   : > { %1350 = vmatpush1.bf16.msra.mxu1 %v1349_v62  ;;  %v2382_v62 = vld [vmem:[%s2340_s30 + $0x38] sm:$0xff] }
  0xfb   : > { %1352 = vmatprep.subr.bf16.mxu1 %v1351_v63  ;;  %v603_v63 = vld [vmem:[#allocation10 + $0x88] sm:$0xff] }
  0xfc   : > { %v1391_v3 = vpack.c.bf16 %v605_v0, %v603_v63  ;;  %v638_v0 = vld [vmem:[#allocation10 + $0x1a0] sm:$0xff] }
  0xfe   : > { %1354 = vmatpush1.bf16.msra.mxu1 %v1353_v4  ;;  %v602_v4 = vld [vmem:[#allocation10 + $0x80] sm:$0xff] }
  0xff   : > { %1356 = vmatprep.subr.bf16.mxu1 %v1355_v5  ;;  %v604_v5 = vld [vmem:[#allocation10 + $0x90] sm:$0xff] }
 0x100   : > { %v1393_v8 = vpack.c.bf16 %v604_v5, %v602_v4  ;;  %v645_v4 = vld [vmem:[#allocation10 + $0x1d8] sm:$0xff] }
 0x102   : > { %1358 = vmatpush1.bf16.msra.mxu1 %v1357_v10  ;;  %v606_v10 = vld [vmem:[#allocation10 + $0xa0] sm:$0xff] }
 0x103   : > { %1360 = vmatprep.subr.bf16.mxu1 %v1359_v11  ;;  %v608_v11 = vld [vmem:[#allocation10 + $0xb0] sm:$0xff] }
 0x104   : > { %v1397_v14 = vpack.c.bf16 %v608_v11, %v606_v10  ;;  %v649_v10 = vld [vmem:[#allocation10 + $0x1f8] sm:$0xff] }
 0x106   : > { %1362 = vmatpush1.bf16.msra.mxu1 %v1361_v16  ;;  %v610_v16 = vld [vmem:[#allocation10 + $0xc0] sm:$0xff] }
 0x107   : > { %1364 = vmatprep.subr.bf16.mxu1 %v1363_v17  ;;  %v612_v17 = vld [vmem:[#allocation10 + $0xd0] sm:$0xff] }
 0x108   : > { %v1401_v20 = vpack.c.bf16 %v612_v17, %v610_v16  ;;  %v868_v16 = vld [vmem:[#allocation13 + $0x8] sm:$0xff]  ;;  %v870_v17 = vld [vmem:[#allocation13 + $0x18] sm:$0xff] }
 0x109   : > { %v1439_v19 = vpack.c.bf16 %v870_v17, %v868_v16  ;;  %v909_v16 = vld [vmem:[#allocation13 + $0x150] sm:$0xff]  ;;  %v912_v17 = vld [vmem:[#allocation13 + $0x168] sm:$0xff] }
 0x10a   : > { %1366 = vmatpush1.bf16.msra.mxu1 %v1365_v22  ;;  %v614_v22 = vld [vmem:[#allocation10 + $0xe0] sm:$0xff] }
 0x10b   : > { %1368 = vmatprep.subr.bf16.mxu1 %v1367_v23  ;;  %v619_v23 = vld [vmem:[#allocation10 + $0x108] sm:$0xff]  ;;  %1440 = vmatprep.subr.bf16.mxu0 %v1439_v19 }
 0x10c   : > { %v1407_v26 = vpack.c.bf16 %v621_v24, %v619_v23  ;;  %v873_v23 = vld [vmem:[#allocation13 + $0x30] sm:$0xff]  ;;  %v875_v24 = vld [vmem:[#allocation13 + $0x40] sm:$0xff] }
 0x10e   : > { %1370 = vmatpush1.bf16.msra.mxu1 %v1369_v28  ;;  %v620_v28 = vld [vmem:[#allocation10 + $0x110] sm:$0xff] }
 0x10f   : > { %1372 = vmatprep.subr.bf16.mxu1 %v1371_v29  ;;  %v623_v29 = vld [vmem:[#allocation10 + $0x128] sm:$0xff]  ;;  %v1409_v31 = vpack.c.bf16 %v620_v28, %v618_v27 }
 0x110   : > { %v1411_v32 = vpack.c.bf16 %v625_v30, %v623_v29  ;;  %v879_v29 = vld [vmem:[#allocation13 + $0x60] sm:$0xff]  ;;  %v881_v30 = vld [vmem:[#allocation13 + $0x70] sm:$0xff] }
 0x112   : > { %1374 = vmatpush1.bf16.msra.mxu1 %v1373_v34  ;;  %v624_v34 = vld [vmem:[#allocation10 + $0x130] sm:$0xff] }
 0x113   : > { %1376 = vmatprep.subr.bf16.mxu1 %v1375_v35  ;;  %v627_v35 = vld [vmem:[#allocation10 + $0x148] sm:$0xff]  ;;  %v1413_v37 = vpack.c.bf16 %v624_v34, %v622_v33  ;;  %v1453_v33 = vpack.c.bf16 %v881_v30, %v879_v29 }
 0x114   : > { %v1415_v38 = vpack.c.bf16 %v629_v36, %v627_v35  ;;  %v883_v35 = vld [vmem:[#allocation13 + $0x80] sm:$0xff]  ;;  %v885_v36 = vld [vmem:[#allocation13 + $0x90] sm:$0xff] }
 0x115   : > { %562 = vmatmul.mubr.f32.vlgmr.msra.gmra.mrb[0].mxu1 %v2363_v40 }
 0x116   : > { %1378 = vmatpush1.bf16.msra.mxu1 %v1377_v42  ;;  %567 = vmatprep.mubr.f32.mxu1 %v2366_v46  ;;  %v628_v42 = vld [vmem:[#allocation10 + $0x150] sm:$0xff] }
 0x117   : > { %1380 = vmatprep.subr.bf16.mxu1 %v1379_v43  ;;  %v631_v43 = vld [vmem:[#allocation10 + $0x168] sm:$0xff]  ;;  %v1417_v45 = vpack.c.bf16 %v628_v42, %v626_v39  ;;  %v1457_v39 = vpack.c.bf16 %v885_v36, %v883_v35  ;;  %v930_v35 = vld [vmem:[#allocation13 + $0x1f8] sm:$0xff] }
 0x118   : > { %v1419_v47 = vpack.c.bf16 %v633_v44, %v631_v43  ;;  %v887_v43 = vld [vmem:[#allocation13 + $0xa0] sm:$0xff]  ;;  %v889_v44 = vld [vmem:[#allocation13 + $0xb0] sm:$0xff] }
 0x119   : > { %568 = vmatmul.mubr.f32.gmra.mrb[2].mxu1 %v2371_v50 }
 0x11a   : > { %1382 = vmatpush1.bf16.msra.mxu1 %v1381_v49  ;;  %573 = vmatprep.mubr.f32.mxu1 %v2374_v54  ;;  %v632_v49 = vld [vmem:[#allocation10 + $0x170] sm:$0xff] }
 0x11b   : > { %1384 = vmatprep.subr.bf16.mxu1 %v1383_v51  ;;  %v635_v51 = vld [vmem:[#allocation10 + $0x188] sm:$0xff]  ;;  %v1421_v53 = vpack.c.bf16 %v632_v49, %v630_v48  ;;  %v1461_v48 = vpack.c.bf16 %v889_v44, %v887_v43  ;;  %v806_v43 = vld [vmem:[#allocation11 + $0x18] sm:$0xff] }
 0x11c   : > { %v1423_v55 = vpack.c.bf16 %v637_v52, %v635_v51  ;;  %v891_v51 = vld [vmem:[#allocation13 + $0xc0] sm:$0xff]  ;;  %v893_v52 = vld [vmem:[#allocation13 + $0xd0] sm:$0xff] }
 0x11d   : > { %574 = vmatmul.mubr.f32.gmra.mrb[4].mxu1 %v2379_v58 }
 0x11e   : > { %1386 = vmatpush1.bf16.msra.mxu1 %v1385_v57  ;;  %579 = vmatprep.mubr.f32.mxu1 %v2382_v62  ;;  %v636_v57 = vld [vmem:[#allocation10 + $0x190] sm:$0xff] }
 0x11f   : > { %1388 = vmatprep.subr.bf16.mxu1 %v1387_v59  ;;  %v639_v59 = vld [vmem:[#allocation10 + $0x1a8] sm:$0xff]  ;;  %v1425_v61 = vpack.c.bf16 %v636_v57, %v634_v56  ;;  %v1465_v56 = vpack.c.bf16 %v893_v52, %v891_v51  ;;  %v741_v51 = vld [vmem:[#allocation5 + $0x10] sm:$0xff] }
 0x120   : > { %v1427_v63 = vpack.c.bf16 %v641_v60, %v639_v59  ;;  %v895_v59 = vld [vmem:[#allocation13 + $0xe0] sm:$0xff]  ;;  %v897_v60 = vld [vmem:[#allocation13 + $0xf0] sm:$0xff] }
 0x121   : > { %580 = vmatmul.mubr.f32.gmra.mrb[6].mxu1 %v2387_v2 }
 0x122   : > { %1390 = vmatpush1.bf16.msra.mxu1 %v1389_v1  ;;  %714 = vmatprep.mubr.f32.mxu1 %v2359_v41  ;;  %v616_v41 = vld [vmem:[#allocation10 + $0xf0] sm:$0xff] }
 0x123   : > { %1392 = vmatprep.subr.bf16.mxu1 %v1391_v3  ;;  %v1405_v25 = vpack.c.bf16 %v616_v41, %v614_v22  ;;  %v640_v1 = vld [vmem:[#allocation10 + $0x1b0] sm:$0xff]  ;;  %v643_v3 = vld [vmem:[#allocation10 + $0x1c8] sm:$0xff]  ;;  %v874_v22 = vld [vmem:[#allocation13 + $0x38] sm:$0xff] }
 0x124   : > { %v1429_v5 = vpack.c.bf16 %v640_v1, %v638_v0  ;;  %v1431_v6 = vpack.c.bf16 %v645_v4, %v643_v3  ;;  %v1469_v0 = vpack.c.bf16 %v897_v60, %v895_v59  ;;  %v899_v3 = vld [vmem:[#allocation13 + $0x100] sm:$0xff]  ;;  %v901_v4 = vld [vmem:[#allocation13 + $0x110] sm:$0xff] }
 0x126   : > { %1394 = vmatpush1.bf16.msra.mxu1 %v1393_v8  ;;  %v644_v8 = vld [vmem:[#allocation10 + $0x1d0] sm:$0xff] }
 0x127   : > { %1396 = vmatprep.subr.bf16.mxu1 %v1395_v9  ;;  %v647_v9 = vld [vmem:[#allocation10 + $0x1e8] sm:$0xff]  ;;  %v1433_v11 = vpack.c.bf16 %v644_v8, %v642_v7  ;;  %v1473_v7 = vpack.c.bf16 %v901_v4, %v899_v3  ;;  %v747_v3 = vld [vmem:[#allocation7] sm:$0xff] }
 0x128   : > { %v1435_v12 = vpack.c.bf16 %v649_v10, %v647_v9  ;;  %v903_v9 = vld [vmem:[#allocation13 + $0x120] sm:$0xff]  ;;  %v905_v10 = vld [vmem:[#allocation13 + $0x130] sm:$0xff]  ;;  %v740_v4 = vld [vmem:[#allocation5 + $0x8] sm:$0xff] }
 0x12a   : > { %1398 = vmatpush1.bf16.msra.mxu1 %v1397_v14  ;;  %v648_v14 = vld [vmem:[#allocation10 + $0x1f0] sm:$0xff] }
 0x12b   : > { %1400 = vmatprep.subr.bf16.mxu1 %v1399_v15  ;;  %v1437_v15 = vpack.c.bf16 %v648_v14, %v646_v13  ;;  %v1477_v13 = vpack.c.bf16 %v905_v10, %v903_v9 }
 0x12e   : > { %1402 = vmatpush1.bf16.msra.mxu1 %v1401_v20  ;;  %v869_v20 = vld [vmem:[#allocation13 + $0x10] sm:$0xff] }
 0x12f   : > { %1404 = vmatprep.subr.bf16.mxu1 %v1403_v21  ;;  %v872_v21 = vld [vmem:[#allocation13 + $0x28] sm:$0xff] }
 0x130   : > { %v1443_v41 = vpack.c.bf16 %v874_v22, %v872_v21  ;;  %v911_v21 = vld [vmem:[#allocation13 + $0x160] sm:$0xff]  ;;  %v913_v22 = vld [vmem:[#allocation13 + $0x170] sm:$0xff] }
 0x132   : > { %1406 = vmatpush1.bf16.msra.mxu1 %v1405_v25  ;;  %v880_v25 = vld [vmem:[#allocation13 + $0x68] sm:$0xff] }
 0x133   : > { %1408 = vmatprep.subr.bf16.mxu1 %v1407_v26  ;;  %v882_v26 = vld [vmem:[#allocation13 + $0x78] sm:$0xff] }
 0x134   : > { %v1451_v28 = vpack.c.bf16 %v882_v26, %v880_v25  ;;  %v919_v25 = vld [vmem:[#allocation13 + $0x1a0] sm:$0xff]  ;;  %v921_v26 = vld [vmem:[#allocation13 + $0x1b0] sm:$0xff] }
 0x135   : > { %v1493_v29 = vpack.c.bf16 %v921_v26, %v919_v25  ;;  %v807_v25 = vld [vmem:[#allocation11 + $0x20] sm:$0xff]  ;;  %v809_v26 = vld [vmem:[#allocation11 + $0x30] sm:$0xff] }
 0x136   : > { %1410 = vmatpush1.bf16.msra.mxu1 %v1409_v31  ;;  %v884_v31 = vld [vmem:[#allocation13 + $0x88] sm:$0xff] }
 0x137   : > { %1412 = vmatprep.subr.bf16.mxu1 %v1411_v32  ;;  %v886_v32 = vld [vmem:[#allocation13 + $0x98] sm:$0xff] }
 0x138   : > { %v1455_v34 = vpack.c.bf16 %v886_v32, %v884_v31  ;;  %v923_v31 = vld [vmem:[#allocation13 + $0x1c0] sm:$0xff]  ;;  %v925_v32 = vld [vmem:[#allocation13 + $0x1d0] sm:$0xff] }
 0x13a   : > { %1414 = vmatpush1.bf16.msra.mxu1 %v1413_v37  ;;  %v888_v37 = vld [vmem:[#allocation13 + $0xa8] sm:$0xff] }
 0x13b   : > { %1416 = vmatprep.subr.bf16.mxu1 %v1415_v38  ;;  %v890_v38 = vld [vmem:[#allocation13 + $0xb8] sm:$0xff] }
 0x13c   : > { %v1459_v42 = vpack.c.bf16 %v890_v38, %v888_v37  ;;  %v927_v37 = vld [vmem:[#allocation13 + $0x1e0] sm:$0xff]  ;;  %v929_v38 = vld [vmem:[#allocation13 + $0x1f0] sm:$0xff] }
 0x13e   : > { %1418 = vmatpush1.bf16.msra.mxu1 %v1417_v45  ;;  %v892_v45 = vld [vmem:[#allocation13 + $0xc8] sm:$0xff] }
 0x13f   : > { %1420 = vmatprep.subr.bf16.mxu1 %v1419_v47  ;;  %v894_v47 = vld [vmem:[#allocation13 + $0xd8] sm:$0xff] }
 0x140   : > { %v1463_v49 = vpack.c.bf16 %v894_v47, %v892_v45  ;;  %v739_v45 = vld [vmem:[#allocation5] sm:$0xff] }
 0x142   : > { %1422 = vmatpush1.bf16.msra.mxu1 %v1421_v53  ;;  %v896_v53 = vld [vmem:[#allocation13 + $0xe8] sm:$0xff] }
 0x143   : > { %1424 = vmatprep.subr.bf16.mxu1 %v1423_v55  ;;  %v898_v55 = vld [vmem:[#allocation13 + $0xf8] sm:$0xff] }
 0x144   : > { %v1467_v57 = vpack.c.bf16 %v898_v55, %v896_v53 }
 0x146   : > { %1426 = vmatpush1.bf16.msra.mxu1 %v1425_v61  ;;  %v900_v61 = vld [vmem:[#allocation13 + $0x108] sm:$0xff] }
 0x147   : > { %1428 = vmatprep.subr.bf16.mxu1 %v1427_v63  ;;  %v902_v63 = vld [vmem:[#allocation13 + $0x118] sm:$0xff] }
 0x148   : > { %v1471_v1 = vpack.c.bf16 %v902_v63, %v900_v61  ;;  %v2406_v61 = vld [vmem:[#allocation5 + $0x30] sm:$0xff] }
 0x14a   : > { %1430 = vmatpush1.bf16.msra.mxu1 %v1429_v5  ;;  %v904_v5 = vld [vmem:[#allocation13 + $0x128] sm:$0xff] }
 0x14b   : > { %1432 = vmatprep.subr.bf16.mxu1 %v1431_v6  ;;  %v906_v6 = vld [vmem:[#allocation13 + $0x138] sm:$0xff] }
 0x14c   : > { %v1475_v8 = vpack.c.bf16 %v906_v6, %v904_v5  ;;  %v748_v5 = vld [vmem:[#allocation7 + $0x8] sm:$0xff] }
 0x14e   : > { %1434 = vmatpush1.bf16.msra.mxu1 %v1433_v11  ;;  %v908_v11 = vld [vmem:[#allocation13 + $0x148] sm:$0xff] }
 0x14f   : > { %1436 = vmatprep.subr.bf16.mxu1 %v1435_v12  ;;  %v910_v12 = vld [vmem:[#allocation13 + $0x158] sm:$0xff] }
 0x150   : > { %v1479_v14 = vpack.c.bf16 %v910_v12, %v908_v11  ;;  %v803_v11 = vld [vmem:[#allocation11] sm:$0xff]  ;;  %v805_v12 = vld [vmem:[#allocation11 + $0x10] sm:$0xff] }
 0x152   : > { %1438 = vmatpush1.bf16.msra.mxu1 %v1437_v15  ;;  %v907_v15 = vld [vmem:[#allocation13 + $0x140] sm:$0xff] }
 0x153   : > { %v1481_v19 = vpack.c.bf16 %v909_v16, %v907_v15  ;;  %v749_v15 = vld [vmem:[#allocation7 + $0x10] sm:$0xff] }
 0x155   : > { %715 = vmatmul.mubr.f32.vlgmr.msra.gmra.mrb[8].mxu1 %v2363_v40  ;;  %v1441_v40 = vpack.c.bf16 %v869_v20, %v867_v18  ;;  %v914_v18 = vld [vmem:[#allocation13 + $0x178] sm:$0xff] }
 0x156   : > { %720 = vmatprep.mubr.f32.mxu1 %v2366_v46  ;;  %v871_v46 = vld [vmem:[#allocation13 + $0x20] sm:$0xff]  ;;  %v1483_v20 = vpack.c.bf16 %v914_v18, %v912_v17  ;;  %v808_v18 = vld [vmem:[#allocation11 + $0x28] sm:$0xff] }
 0x157   : > { %1442 = vmatpush1.bf16.msra.mxu0 %v1441_v40  ;;  %v916_v40 = vld [vmem:[#allocation13 + $0x188] sm:$0xff] }
 0x158   : > { %1444 = vmatprep.subr.bf16.mxu0 %v1443_v41  ;;  %v918_v41 = vld [vmem:[#allocation13 + $0x198] sm:$0xff] }
 0x159   : > { %721 = vmatmul.mubr.f32.gmra.mrb[10].mxu1 %v2371_v50  ;;  %v876_v50 = vld [vmem:[#allocation13 + $0x48] sm:$0xff] }
 0x15a   : > { %726 = vmatprep.mubr.f32.mxu1 %v2374_v54  ;;  %v878_v54 = vld [vmem:[#allocation13 + $0x58] sm:$0xff] }
 0x15d   : > { %727 = vmatmul.mubr.f32.gmra.mrb[12].mxu1 %v2379_v58  ;;  %v1445_v58 = vpack.c.bf16 %v873_v23, %v871_v46  ;;  %v1485_v46 = vpack.c.bf16 %v913_v22, %v911_v21  ;;  %v1487_v23 = vpack.c.bf16 %v918_v41, %v916_v40  ;;  %v750_v21 = vld [vmem:[#allocation7 + $0x18] sm:$0xff] }
 0x15e   : > { %732 = vmatprep.mubr.f32.mxu1 %v2382_v62  ;;  %v1447_v62 = vpack.c.bf16 %v878_v54, %v876_v50  ;;  %v915_v50 = vld [vmem:[#allocation13 + $0x180] sm:$0xff]  ;;  %v917_v54 = vld [vmem:[#allocation13 + $0x190] sm:$0xff] }
 0x15f   : > { %1446 = vmatpush1.bf16.msra.mxu0 %v1445_v58  ;;  %v920_v58 = vld [vmem:[#allocation13 + $0x1a8] sm:$0xff] }
 0x160   : > { %1448 = vmatprep.subr.bf16.mxu0 %v1447_v62  ;;  %v922_v62 = vld [vmem:[#allocation13 + $0x1b8] sm:$0xff] }
 0x161   : > { %733 = vmatmul.mubr.f32.gmra.mrb[14].mxu1 %v2387_v2  ;;  %v877_v2 = vld [vmem:[#allocation13 + $0x50] sm:$0xff] }
 0x162   : > { %v1449_v27 = vpack.c.bf16 %v877_v2, %v875_v24  ;;  %v1489_v24 = vpack.c.bf16 %v917_v54, %v915_v50  ;;  %v1491_v2 = vpack.c.bf16 %v922_v62, %v920_v58  ;;  %v1505_v50 = vpack.c.bf16 %v805_v12, %v803_v11  ;;  %v746_v11 = vld [vmem:[#allocation5 + $0x38] sm:$0xff] }
 0x163   : > { %v754_v12 = vld [vmem:[#allocation7 + $0x38] sm:$0xff] }
 0x164   : > { %1450 = vmatpush1.bf16.msra.mxu0 %v1449_v27  ;;  %v924_v27 = vld [vmem:[#allocation13 + $0x1c8] sm:$0xff] }
 0x165   : > { %1452 = vmatprep.subr.bf16.mxu0 %v1451_v28  ;;  %v926_v28 = vld [vmem:[#allocation13 + $0x1d8] sm:$0xff] }
 0x166   : > { %v1495_v30 = vpack.c.bf16 %v926_v28, %v924_v27 }
 0x168   : > { %1454 = vmatpush1.bf16.msra.mxu0 %v1453_v33  ;;  %v1497_v33 = vpack.c.bf16 %v925_v32, %v923_v31  ;;  %v812_v32 = vld [vmem:[#allocation11 + $0x48] sm:$0xff] }
 0x169   : > { %1456 = vmatprep.subr.bf16.mxu0 %v1455_v34  ;;  %v928_v34 = vld [vmem:[#allocation13 + $0x1e8] sm:$0xff] }
 0x16a   : > { %v1499_v36 = vpack.c.bf16 %v930_v35, %v928_v34  ;;  %v744_v34 = vld [vmem:[#allocation5 + $0x28] sm:$0xff] }
 0x16b   : > { %v752_v35 = vld [vmem:[#allocation7 + $0x28] sm:$0xff] }
 0x16c   : > { %1458 = vmatpush1.bf16.msra.mxu0 %v1457_v39  ;;  %v1501_v39 = vpack.c.bf16 %v929_v38, %v927_v37 }
 0x16d   : > { %1460 = vmatprep.subr.bf16.mxu0 %v1459_v42  ;;  %v804_v42 = vld [vmem:[#allocation11 + $0x8] sm:$0xff] }
 0x16e   : > { %v1503_v44 = vpack.c.bf16 %v806_v43, %v804_v42  ;;  %v1509_v43 = vpack.c.bf16 %v809_v26, %v807_v25 }
 0x170   : > { %1462 = vmatpush1.bf16.msra.mxu0 %v1461_v48 }
 0x171   : > { %1464 = vmatprep.subr.bf16.mxu0 %v1463_v49 }
 0x174   : > { %1466 = vmatpush1.bf16.msra.mxu0 %v1465_v56  ;;  %v743_v56 = vld [vmem:[#allocation5 + $0x20] sm:$0xff] }
 0x175   : > { %1468 = vmatprep.subr.bf16.mxu0 %v1467_v57 }
 0x178   : > { %1470 = vmatpush1.bf16.msra.mxu0 %v1469_v0 }
 0x179   : > { %1472 = vmatprep.subr.bf16.mxu0 %v1471_v1 }
 0x17c   : > { %1474 = vmatpush1.bf16.msra.mxu0 %v1473_v7 }
 0x17d   : > { %1476 = vmatprep.subr.bf16.mxu0 %v1475_v8 }
 0x180   : > { %1478 = vmatpush1.bf16.msra.mxu0 %v1477_v13 }
 0x181   : > { %1480 = vmatprep.subr.bf16.mxu0 %v1479_v14 }
 0x184   : > { %1482 = vmatpush1.bf16.msra.mxu0 %v1481_v19  ;;  %v810_v19 = vld [vmem:[#allocation11 + $0x38] sm:$0xff] }
 0x185   : > { %1484 = vmatprep.subr.bf16.mxu0 %v1483_v20  ;;  %v742_v20 = vld [vmem:[#allocation5 + $0x18] sm:$0xff] }
 0x188   : > { %1486 = vmatpush1.bf16.msra.mxu0 %v1485_v46 }
 0x189   : > { %1488 = vmatprep.subr.bf16.mxu0 %v1487_v23 }
 0x18c   : > { %1490 = vmatpush1.bf16.msra.mxu0 %v1489_v24 }
 0x18d   : > { %1492 = vmatprep.subr.bf16.mxu0 %v1491_v2  ;;  %v1507_v2 = vpack.c.bf16 %v810_v19, %v808_v18 }
 0x190   : > { %1494 = vmatpush1.bf16.msra.mxu0 %v1493_v29  ;;  %v751_v29 = vld [vmem:[#allocation7 + $0x20] sm:$0xff] }
 0x191   : > { %1496 = vmatprep.subr.bf16.mxu0 %v1495_v30 }
 0x194   : > { %1498 = vmatpush1.bf16.msra.mxu0 %v1497_v33  ;;  %v814_v33 = vld [vmem:[#allocation11 + $0x58] sm:$0xff] }
 0x195   : > { %1500 = vmatprep.subr.bf16.mxu0 %v1499_v36 }
 0x198   : > { %1502 = vmatpush1.bf16.msra.mxu0 %v1501_v39 }
 0x199   : > { %1504 = vmatprep.subr.bf16.mxu0 %v1503_v44 }
 0x1e8   : > { %v563_v47 = vpop.f32.mrb[0].mxu1 }
 0x1e9   : > { %v2398_v48 = vmul.f32 %v739_v45, %v563_v47  ;;  %v565_v49 = vpop.f32.mrb[1].mxu1  ;;  %v779_v7 = vmul.f32 %v747_v3, %v563_v47 }
 0x1ea   : > { %v2418_v13 = vmul.f32 %v740_v4, %v565_v49  ;;  %v780_v14 = vmul.f32 %v748_v5, %v565_v49 }
 0x1ec   : > { %v569_v52 = vpop.f32.mrb[2].mxu1 }
 0x1ed   : > { %v2400_v53 = vmul.f32 %v741_v51, %v569_v52  ;;  %v571_v55 = vpop.f32.mrb[3].mxu1  ;;  %v781_v54 = vmul.f32 %v749_v15, %v569_v52  ;;  %v811_v52 = vld [vmem:[#allocation11 + $0x40] sm:$0xff] }
 0x1ee   : > { %v2428_v27 = vmul.f32 %v742_v20, %v571_v55  ;;  %v782_v28 = vmul.f32 %v750_v21, %v571_v55  ;;  %v813_v55 = vld [vmem:[#allocation11 + $0x50] sm:$0xff] }
 0x1f0   : > { %v575_v57 = vpop.f32.mrb[4].mxu1 }
 0x1f1   : > { %v2402_v59 = vmul.f32 %v743_v56, %v575_v57  ;;  %v2404_v60 = vpop.f32.mrb[5].mxu1  ;;  %v783_v44 = vmul.f32 %v751_v29, %v575_v57  ;;  %v818_v57 = vld [vmem:[#allocation11 + $0x78] sm:$0xff] }
 0x1f4   : > { %v2408_v63 = vpop.f32.mrb[6].mxu1 }
 0x1f5   : > { %v2412_v0 = vmul.f32 %v2406_v61, %v2408_v63  ;;  %v2414_v1 = vpop.f32.mrb[7].mxu1 }
 0x228   : > { %v716_v6 = vpop.f32.mrb[8].mxu1 }
 0x229   : > { %v2416_v8 = vmul.f32 %v747_v3, %v716_v6  ;;  %v787_v9 = vmul.f32 %v739_v45, %v716_v6  ;;  %v718_v10 = vpop.f32.mrb[9].mxu1  ;;  %v2439_v3 = vmul.f32 %v744_v34, %v2404_v60 }
 0x22a   : > { %v2420_v16 = vmul.f32 %v748_v5, %v718_v10  ;;  %v788_v17 = vmul.f32 %v740_v4, %v718_v10  ;;  %v784_v4 = vmul.f32 %v752_v35, %v2404_v60  ;;  %v753_v5 = vld [vmem:[#allocation7 + $0x30] sm:$0xff] }
 0x22b   : > { %v771_v22 = vsub.f32 %v2398_v48, %v2416_v8  ;;  %v795_v40 = vadd.f32 %v787_v9, %v779_v7  ;;  %v816_v9 = vld [vmem:[#allocation11 + $0x68] sm:$0xff]  ;;  %v785_v18 = vmul.f32 %v753_v5, %v2408_v63  ;;  %v822_v63 = vld [vmem:[#allocation11 + $0x98] sm:$0xff] }
 0x22c   : > { %v772_v41 = vsub.f32 %v2418_v13, %v2420_v16  ;;  %v722_v46 = vpop.f32.mrb[10].mxu1  ;;  %v796_v23 = vadd.f32 %v788_v17, %v780_v14  ;;  %v1513_v17 = vpack.c.bf16 %v813_v55, %v811_v52  ;;  %v829_v52 = vld [vmem:[#allocation11 + $0xd0] sm:$0xff]  ;;  %v832_v55 = vld [vmem:[#allocation11 + $0xe8] sm:$0xff]  ;;  %v831_v16 = vld [vmem:[#allocation11 + $0xe0] sm:$0xff] }
 0x22d   : > { %v2426_v58 = vmul.f32 %v749_v15, %v722_v46  ;;  %v789_v62 = vmul.f32 %v741_v51, %v722_v46  ;;  %v724_v24 = vpop.f32.mrb[11].mxu1  ;;  %v1511_v51 = vpack.c.bf16 %v814_v33, %v812_v32  ;;  %v815_v46 = vld [vmem:[#allocation11 + $0x60] sm:$0xff]  ;;  %v821_v33 = vld [vmem:[#allocation11 + $0x90] sm:$0xff] }
 0x22e   : > { %v2430_v30 = vmul.f32 %v750_v21, %v724_v24  ;;  %v790_v31 = vmul.f32 %v742_v20, %v724_v24  ;;  %995 = vmatprep.mubr.f32.mxu0 %v796_v23  ;;  %v817_v23 = vld [vmem:[#allocation11 + $0x70] sm:$0xff]  ;;  %v819_v32 = vld [vmem:[#allocation11 + $0x80] sm:$0xff] }
 0x22f   : > { %v773_v36 = vsub.f32 %v2400_v53, %v2426_v58  ;;  %v797_v37 = vadd.f32 %v789_v62, %v781_v54  ;;  %996 = vmatmul.mubr.f32.vlgmr.msra.gmra.mrb[0].mxu0 %v795_v40  ;;  %v1515_v40 = vpack.c.bf16 %v818_v57, %v816_v9  ;;  %v786_v62 = vmul.f32 %v754_v12, %v2414_v1  ;;  %v838_v9 = vld [vmem:[#allocation11 + $0x118] sm:$0xff] }
 0x230   : > { %v774_v38 = vsub.f32 %v2428_v27, %v2430_v30  ;;  %v798_v39 = vadd.f32 %v790_v31, %v782_v28  ;;  %1506 = vmatpush1.bf16.msra.mxu0 %v1505_v50  ;;  %v728_v42 = vpop.f32.mrb[12].mxu1  ;;  %v2453_v50 = vmul.f32 %v746_v11, %v2414_v1  ;;  %v824_v1 = vld [vmem:[#allocation11 + $0xa8] sm:$0xff] }
 0x231   : > { %v2436_v45 = vmul.f32 %v751_v29, %v728_v42  ;;  %v791_v47 = vmul.f32 %v743_v56, %v728_v42  ;;  %v730_v49 = vpop.f32.mrb[13].mxu1  ;;  %1508 = vmatprep.subr.bf16.mxu0 %v1507_v2  ;;  %v820_v2 = vld [vmem:[#allocation11 + $0x88] sm:$0xff]  ;;  %v1517_v29 = vpack.c.bf16 %v817_v23, %v815_v46  ;;  %v825_v42 = vld [vmem:[#allocation11 + $0xb0] sm:$0xff]  ;;  %v846_v46 = vld [vmem:[#allocation11 + $0x158] sm:$0xff] }
 0x232   : > { %v2442_v6 = vmul.f32 %v752_v35, %v730_v49  ;;  %v792_v7 = vmul.f32 %v744_v34, %v730_v49  ;;  %1001 = vmatprep.mubr.f32.mxu0 %v798_v39  ;;  %v1519_v31 = vpack.c.bf16 %v822_v63, %v820_v2  ;;  %v826_v34 = vld [vmem:[#allocation11 + $0xb8] sm:$0xff]  ;;  %v1521_v35 = vpack.c.bf16 %v821_v33, %v819_v32  ;;  %v823_v39 = vld [vmem:[#allocation11 + $0xa0] sm:$0xff]  ;;  %v845_v2 = vld [vmem:[#allocation11 + $0x150] sm:$0xff] }
 0x233   : > { %v775_v56 = vsub.f32 %v2402_v59, %v2436_v45  ;;  %v799_v10 = vadd.f32 %v791_v47, %v783_v44  ;;  %1002 = vmatmul.mubr.f32.gmra.mrb[2].mxu0 %v797_v37  ;;  %v1523_v37 = vpack.c.bf16 %v826_v34, %v824_v1  ;;  %v830_v44 = vld [vmem:[#allocation11 + $0xd8] sm:$0xff]  ;;  %v1525_v47 = vpack.c.bf16 %v825_v42, %v823_v39  ;;  %v848_v63 = vld [vmem:[#allocation11 + $0x168] sm:$0xff]  ;;  %v849_v32 = vld [vmem:[#allocation11 + $0x170] sm:$0xff] }
 0x234   : > { %v776_v14 = vsub.f32 %v2439_v3, %v2442_v6  ;;  %v800_v15 = vadd.f32 %v792_v7, %v784_v4  ;;  %1510 = vmatpush1.bf16.msra.mxu0 %v1509_v43  ;;  %v734_v60 = vpop.f32.mrb[14].mxu1  ;;  %v828_v43 = vld [vmem:[#allocation11 + $0xc8] sm:$0xff]  ;;  %v834_v4 = vld [vmem:[#allocation11 + $0xf8] sm:$0xff]  ;;  %v853_v39 = vld [vmem:[#allocation11 + $0x190] sm:$0xff] }
 0x235   : > { %v2449_v19 = vmul.f32 %v753_v5, %v734_v60  ;;  %v793_v20 = vmul.f32 %v2406_v61, %v734_v60  ;;  %v736_v21 = vpop.f32.mrb[15].mxu1  ;;  %1512 = vmatprep.subr.bf16.mxu0 %v1511_v51  ;;  %v1527_v49 = vpack.c.bf16 %v830_v44, %v828_v43  ;;  %v827_v51 = vld [vmem:[#allocation11 + $0xc0] sm:$0xff]  ;;  %v1531_v13 = vpack.c.bf16 %v834_v4, %v832_v55  ;;  %v836_v7 = vld [vmem:[#allocation11 + $0x108] sm:$0xff]  ;;  %v842_v60 = vld [vmem:[#allocation11 + $0x138] sm:$0xff] }
 0x236   : > { %v2455_v54 = vmul.f32 %v754_v12, %v736_v21  ;;  %v794_v24 = vmul.f32 %v746_v11, %v736_v21  ;;  %1007 = vmatprep.mubr.f32.mxu0 %v800_v15  ;;  %v1529_v5 = vpack.c.bf16 %v829_v52, %v827_v51  ;;  %v835_v11 = vld [vmem:[#allocation11 + $0x100] sm:$0xff]  ;;  %v837_v12 = vld [vmem:[#allocation11 + $0x110] sm:$0xff]  ;;  %v840_v15 = vld [vmem:[#allocation11 + $0x128] sm:$0xff] }
 0x237   : > { %v777_v25 = vsub.f32 %v2412_v0, %v2449_v19  ;;  %v801_v61 = vadd.f32 %v793_v20, %v785_v18  ;;  %1008 = vmatmul.mubr.f32.gmra.mrb[4].mxu0 %v799_v10  ;;  %v1535_v10 = vpack.c.bf16 %v838_v9, %v836_v7  ;;  %v1539_v18 = vpack.c.bf16 %v842_v60, %v840_v15  ;;  %v839_v20 = vld [vmem:[#allocation11 + $0x120] sm:$0xff]  ;;  %v841_v21 = vld [vmem:[#allocation11 + $0x130] sm:$0xff]  ;;  %v852_v33 = vld [vmem:[#allocation11 + $0x188] sm:$0xff] }
 0x238   : > { %v778_v26 = vsub.f32 %v2453_v50, %v2455_v54  ;;  %v802_v28 = vadd.f32 %v794_v24, %v786_v62  ;;  %1514 = vmatpush1.bf16.msra.mxu0 %v1513_v17  ;;  %v1537_v17 = vpack.c.bf16 %v837_v12, %v835_v11  ;;  %v1541_v23 = vpack.c.bf16 %v841_v21, %v839_v20  ;;  %v843_v24 = vld [vmem:[#allocation11 + $0x140] sm:$0xff]  ;;  %v854_v1 = vld [vmem:[#allocation11 + $0x198] sm:$0xff]  ;;  %v856_v42 = vld [vmem:[#allocation11 + $0x1a8] sm:$0xff] }
 0x239   : > { %1516 = vmatprep.subr.bf16.mxu0 %v1515_v40  ;;  %v844_v40 = vld [vmem:[#allocation11 + $0x148] sm:$0xff]  ;;  %v858_v43 = vld [vmem:[#allocation11 + $0x1b8] sm:$0xff]  ;;  %v857_v51 = vld [vmem:[#allocation11 + $0x1b0] sm:$0xff] }
 0x23a   : > { %1013 = vmatprep.mubr.f32.mxu0 %v802_v28  ;;  %v1543_v62 = vpack.c.bf16 %v846_v46, %v844_v40  ;;  %v1545_v28 = vpack.c.bf16 %v845_v2, %v843_v24  ;;  %v860_v52 = vld [vmem:[#allocation11 + $0x1c8] sm:$0xff]  ;;  %v862_v55 = vld [vmem:[#allocation11 + $0x1d8] sm:$0xff]  ;;  %v865_v11 = vld [vmem:[#allocation11 + $0x1f0] sm:$0xff] }
 0x23b   : > { %1014 = vmatmul.mubr.f32.gmra.mrb[6].mxu0 %v801_v61  ;;  %v850_v61 = vld [vmem:[#allocation11 + $0x178] sm:$0xff] }
 0x23c   : > { %1518 = vmatpush1.bf16.msra.mxu0 %v1517_v29  ;;  %1084 = vmatprep.mubr.f32.mxu0 %v772_v41  ;;  %v833_v41 = vld [vmem:[#allocation11 + $0xf0] sm:$0xff]  ;;  %v1547_v29 = vpack.c.bf16 %v850_v61, %v848_v63  ;;  %v866_v7 = vld [vmem:[#allocation11 + $0x1f8] sm:$0xff] }
 0x23d   : > { %1520 = vmatprep.subr.bf16.mxu0 %v1519_v31  ;;  %v1533_v57 = vpack.c.bf16 %v833_v41, %v831_v16  ;;  %v847_v31 = vld [vmem:[#allocation11 + $0x160] sm:$0xff]  ;;  %v861_v16 = vld [vmem:[#allocation11 + $0x1d0] sm:$0xff]  ;;  %v864_v41 = vld [vmem:[#allocation11 + $0x1e8] sm:$0xff] }
 0x23e   : > { %v1549_v34 = vpack.c.bf16 %v849_v32, %v847_v31 }
 0x240   : > { %1522 = vmatpush1.bf16.msra.mxu0 %v1521_v35  ;;  %v1551_v35 = vpack.c.bf16 %v854_v1, %v852_v33 }
 0x241   : > { %1524 = vmatprep.subr.bf16.mxu0 %v1523_v37  ;;  %v851_v37 = vld [vmem:[#allocation11 + $0x180] sm:$0xff] }
 0x242   : > { %v1553_v44 = vpack.c.bf16 %v853_v39, %v851_v37 }
 0x244   : > { %1526 = vmatpush1.bf16.msra.mxu0 %v1525_v47  ;;  %v1555_v47 = vpack.c.bf16 %v858_v43, %v856_v42 }
 0x245   : > { %1528 = vmatprep.subr.bf16.mxu0 %v1527_v49  ;;  %v855_v49 = vld [vmem:[#allocation11 + $0x1a0] sm:$0xff] }
 0x246   : > { %v1557_v4 = vpack.c.bf16 %v857_v51, %v855_v49 }
 0x248   : > { %1530 = vmatpush1.bf16.msra.mxu0 %v1529_v5  ;;  %v1559_v5 = vpack.c.bf16 %v862_v55, %v860_v52 }
 0x249   : > { %1532 = vmatprep.subr.bf16.mxu0 %v1531_v13  ;;  %v859_v13 = vld [vmem:[#allocation11 + $0x1c0] sm:$0xff] }
 0x24a   : > { %v1561_v9 = vpack.c.bf16 %v861_v16, %v859_v13 }
 0x24c   : > { %1534 = vmatpush1.bf16.msra.mxu0 %v1533_v57  ;;  %v1563_v57 = vpack.c.bf16 %v866_v7, %v864_v41 }
 0x24d   : > { %1536 = vmatprep.subr.bf16.mxu0 %v1535_v10  ;;  %v863_v10 = vld [vmem:[#allocation11 + $0x1e0] sm:$0xff] }
 0x24e   : > { %v1565_v12 = vpack.c.bf16 %v865_v11, %v863_v10 }
 0x250   : > { %1538 = vmatpush1.bf16.msra.mxu0 %v1537_v17 }
 0x251   : > { %1540 = vmatprep.subr.bf16.mxu0 %v1539_v18 }
 0x254   : > { %1542 = vmatpush1.bf16.msra.mxu0 %v1541_v23 }
 0x255   : > { %1544 = vmatprep.subr.bf16.mxu0 %v1543_v62 }
 0x258   : > { %1546 = vmatpush1.bf16.msra.mxu0 %v1545_v28 }
 0x259   : > { %1548 = vmatprep.subr.bf16.mxu0 %v1547_v29 }
 0x25c   : > { %1550 = vmatpush1.bf16.msra.mxu0 %v1549_v34 }
 0x25d   : > { %1552 = vmatprep.subr.bf16.mxu0 %v1551_v35 }
 0x260   : > { %1554 = vmatpush1.bf16.msra.mxu0 %v1553_v44 }
 0x261   : > { %1556 = vmatprep.subr.bf16.mxu0 %v1555_v47 }
 0x264   : > { %1558 = vmatpush1.bf16.msra.mxu0 %v1557_v4 }
 0x265   : > { %1560 = vmatprep.subr.bf16.mxu0 %v1559_v5 }
 0x268   : > { %1562 = vmatpush1.bf16.msra.mxu0 %v1561_v9 }
 0x269   : > { %1564 = vmatprep.subr.bf16.mxu0 %v1563_v57 }
 0x26c   : > { %1566 = vmatpush1.bf16.msra.mxu0 %v1565_v12 }
 0x26f   : > { %1085 = vmatmul.mubr.f32.vlgmr.msra.gmra.mrb[0].mxu0 %v771_v22 }
 0x270   : > { %1090 = vmatprep.mubr.f32.mxu0 %v774_v38 }
 0x273   : > { %1091 = vmatmul.mubr.f32.gmra.mrb[2].mxu0 %v773_v36 }
 0x274   : > { %1096 = vmatprep.mubr.f32.mxu0 %v776_v14 }
 0x277   : > { %1097 = vmatmul.mubr.f32.gmra.mrb[4].mxu0 %v775_v56 }
 0x278   : > { %1102 = vmatprep.mubr.f32.mxu0 %v778_v26 }
 0x27b   : > { %1103 = vmatmul.mubr.f32.gmra.mrb[6].mxu0 %v777_v25 }
 0x342   : > { %v1086_v48 = vpop.f32.mrb[0].mxu0 }
 0x343   : > { %1109 = vst [vmem:[%s420_s8] sm:$0xff] %v1086_v48  ;;  %v1088_v53 = vpop.f32.mrb[1].mxu0 }
 0x344   : > { %1110 = vst [vmem:[%s420_s8 + $0x8] sm:$0xff] %v1088_v53 }
 0x346   : > { %v1092_v8 = vpop.f32.mrb[2].mxu0 }
 0x347   : > { %1111 = vst [vmem:[%s420_s8 + $0x10] sm:$0xff] %v1092_v8  ;;  %v1094_v22 = vpop.f32.mrb[3].mxu0 }
 0x348   : > { %1112 = vst [vmem:[%s420_s8 + $0x18] sm:$0xff] %v1094_v22 }
 0x34a   : > { %v1098_v59 = vpop.f32.mrb[4].mxu0 }
 0x34b   : > { %1113 = vst [vmem:[%s420_s8 + $0x20] sm:$0xff] %v1098_v59  ;;  %v1100_v58 = vpop.f32.mrb[5].mxu0 }
 0x34c   : > { %1114 = vst [vmem:[%s420_s8 + $0x28] sm:$0xff] %v1100_v58 }
 0x34e   : > { %v1104_v0 = vpop.f32.mrb[6].mxu0 }
 0x34f   : > { %1115 = vst [vmem:[%s420_s8 + $0x30] sm:$0xff] %v1104_v0  ;;  %v1106_v27 = vpop.f32.mrb[7].mxu0 }
 0x350   : > { %1116 = vst [vmem:[%s420_s8 + $0x38] sm:$0xff] %v1106_v27 }
 0x351   : > { %1913 = shalt.err (!%p1910_p8)
}
 0x352   : > { %s1914_s12 = scalar_lea.hbm %s2494_s16, 1024  ;;  %s1918_s8 = scalar_lea.hbm %s2575_s7, 2048 }
 0x353   : > { %p1915_p3 = scmp.ne.s32.totalorder %s2494_s16, %s1914_s12  ;;  %p1919_p13 = scmp.lt.u32.totalorder %s2494_s16, %s2575_s7 }
 0x354   : > { %p1920_p1 = scmp.lt.u32.totalorder %s1918_s8, %s1914_s12  ;;  %p1922_p2 = scmp.lt.u32.totalorder %s1914_s12, %s2494_s16 }
 0x355   : > { %p1916_p11 = pnand %p1915_p3, %p2576_p9 }
 0x356   : > { %p1921_p4 = por %p1920_p1, %p1919_p13 }
 0x357   : > { %p1917_p6 = pneg %p1916_p11 }
 0x358   : > { %p1923_p10 = por %p1922_p2, %p1921_p4 }
 0x35a   : > { %p1924_p12 = pnand %p1923_p10, %p1917_p6 }
 0x35c   : > { %1927 = shalt.err (!%p1924_p12)
}
 0x35d   : > { %s2006_s19 = smov 256   ;;  %s2007_s1 = smov 16  }
 0x35e   : > { %1601 = dma.vmem_to_hbm [thread:$0]  (%p2576_p9), %s2489_s9, 1024, %s2494_s16, %s1118_s11, %s2006_s19, %s2006_s19, %s2007_s1  }
 0x35f PF: > { %s1149_s27 = sand.u32 1, %s1974_s24   ;;  %p2577_p0 = scmp.ne.s32.totalorder %s2570_s10, 0 }
 0x360   : > { %p2578_p7 = scmp.ge.s32.totalorder %s1994_s29, 2  ;;  %s1150_s18 = scalar_lea.sflag [#allocation4], %s1149_s27 }
 0x362   : > { %p1627_p5 = pnand %p2578_p7, %p2577_p0 }
 0x364   : > { %1969 = dma.done.wait (!%p1627_p5), %s1150_s18, 1024  }
 0x365   : > { %1971 = vsyncadd (!%p1627_p5), %s1150_s18, 4294966272  ;;  %s26_s29 = sadd.s32 1, %s1994_s29   ;;  %s2579_s24 = smov %s1978_s25 }
 0x366   : > { %p23_p8 = scmp.ge.s32.totalorder %s26_s29, 4   ;;  %s2580_s25 = smov %s1982_s26 }
 0x367   : > { %s2581_s26 = smov %s2278_s23  ;;  %s2582_s27 = smov %s1990_s28 }
 0x368   : > { %s2583_s28 = smov %s2585_s22  ;;  %25 = sbr.rel (!%p23_p8) target bundleno = 12 (0xc), region = 119 }
 0x36f   :  { %1155 = vsyncpa [#allocation3], 1 }
 0x370   :  { %1157 = vsyncpa [#allocation3 + $0x1], 1 }
 0x371   :  { %1158 = vsyncpa [#allocation6], 1 }
 0x372   :  { %1159 = vsyncpa [#allocation9], 1 }
 0x373   :  { %1160 = vsyncpa [#allocation12], 1 }
 0x374   :  { %1161 = vsyncpa [#allocation4], 1 }
 0x375   :  { %1163 = vsyncpa [#allocation4 + $0x1], 1 }

</bundles_post_ra>
